<compile_context>
chip_gen: v7x
topology: tpu7x:2x2x1
jax: 0.10.0
libtpu: 0.0.40
codegen_flags: <defaults>
</compile_context>

<pallas_src>
import functools

import jax
import jax.numpy as jnp
from jax.experimental import pallas as pl
from jax.experimental.pallas import tpu as pltpu

EPS = 1e-5  # nn.BatchNorm2d default


def _double_conv_kernel(xp_ref, w1b_ref, w2b_ref,
                        g1_ref, be1_ref, g2_ref, be2_ref,
                        o_ref, h1p_ref, *, H, W, Cout):
    # xp_ref : (N, H+2, W*Cin)  bf16, row-padded (halo rows zero), lane-dense
    # w*b_ref: (3, K, W*Cout)   bf16 banded conv weights (per ky), W-pad baked in
    # g*/be* : (1, W*Cout)      f32 BN gamma/beta tiled W times along lanes
    # o_ref  : (N, H, W*Cout)   f32 lane-dense output slab
    # h1p_ref: (N, H+2, W*Cout) bf16 scratch (row-padded conv1 activation)
    N = xp_ref.shape[0]
    R = H + 2
    WC = W * Cout
    cnt = float(N * H * W)                    # elements per channel

    def conv3x3(src_ref, w_ref):
        # 3 MXU matmuls over ALL padded rows of the contiguous LHS, then
        # row-shifted adds on the f32 results. No activation copies/casts.
        K = src_ref.shape[2]
        src2d = src_ref[...].reshape(N * R, K)
        acc = jnp.zeros((N, H, WC), jnp.float32)
        for ky in range(3):
            p = jnp.dot(src2d, w_ref[ky],
                        preferred_element_type=jnp.float32).reshape(N, R, WC)
            acc = acc + p[:, ky:ky + H, :]
        return acc

    def _fold(v):
        # v: (1, WC) per-(w, channel) sums. Fold the W lane groups onto each
        # channel AND replicate back across all groups with log2(W) circular
        # lane rotations (XLU) — requires W to be a power of two.
        k = Cout
        while k < WC:
            v = v + pltpu.roll(v, shift=k, axis=1)
            k *= 2
        return v

    def bn_relu(acc, g_ref, be_ref):
        # Single-pass exact-f32 batch stats (sum / sumsq), biased variance as
        # PyTorch uses for training-mode normalization.
        acc2 = acc.reshape(N * H, WC)
        s = _fold(jnp.sum(acc2, axis=0, keepdims=True))
        ss = _fold(jnp.sum(acc2 * acc2, axis=0, keepdims=True))
        mu = s / cnt
        var = jnp.maximum(ss / cnt - mu * mu, 0.0)      # guard fp negatives
        a = g_ref[...] * jax.lax.rsqrt(var + EPS)       # (1, WC)
        c = be_ref[...] - mu * a
        return jnp.maximum(acc * a.reshape(1, 1, WC) + c.reshape(1, 1, WC), 0.0)

    # ---- conv1 -> BN1 -> ReLU (conv bias cancelled exactly by BN mean) ----
    h1 = bn_relu(conv3x3(xp_ref, w1b_ref), g1_ref, be1_ref)

    # ---- row-padded, lane-0-aligned bf16 intermediate for conv2 ----
    # Only the two halo rows need zero fill; all stores are full 128-lane vst.
    zrow = jnp.zeros((N, 1, WC), jnp.bfloat16)
    h1p_ref[:, pl.ds(0, 1), :] = zrow
    h1p_ref[:, pl.ds(H + 1, 1), :] = zrow
    h1p_ref[:, pl.ds(1, H), :] = h1.astype(jnp.bfloat16)

    # ---- conv2 -> BN2 -> ReLU, full-width store to lane-dense output ----
    o_ref[...] = bn_relu(conv3x3(h1p_ref, w2b_ref), g2_ref, be2_ref)


def _banded_weights(w, W):
    """PyTorch (Cout, Cin, 3, 3) conv weight -> (3, W*Cin, W*Cout) banded RHS.

    rhs[ky, p*Cin+ci, w*Cout+co] = w[co, ci, ky, kx] with p = w + kx - 1 when
    0 <= p < W, else 0 (the horizontal zero-padding is baked into the weights,
    so the activation never carries pad columns).  A matmul of a lane-dense
    (rows=(n, padded h), lanes=(w, ci)) slab against rhs[ky] yields the
    lane-dense (w, co) conv partial sum for that ky.
    """
    Cout, Cin, KH, KW = w.shape
    w_t = jnp.transpose(w, (2, 3, 1, 0))                       # (ky, kx, Cin, Cout)
    p = jnp.arange(W)[None, :, None]                           # source column
    wi = jnp.arange(W)[None, None, :]                          # output column
    kx = jnp.arange(KW)[:, None, None]
    sel = (p == wi + kx - 1).astype(w.dtype)                   # (kx, p, w)
    banded = jnp.einsum('kpw,ykic->ypiwc', sel, w_t)           # (ky, p, ci, w, co)
    return banded.reshape(KH, W * Cin, W * Cout)


@jax.jit
def double_conv_forward(x_nchw, params):
    """x_nchw: (N, Cin, H, W) float32. Returns (N, Cout, H, W) float32."""
    w1, b1, g1, be1, w2, b2, g2, be2 = params
    del b1, b2  # mathematically no-ops: BN mean subtraction cancels conv bias
    N, Cin, H, W = x_nchw.shape
    Cout = w1.shape[0]
    assert W & (W - 1) == 0, "roll-based BN fold requires power-of-two W"

    # NCHW -> NHWC -> pad rows only -> lane-dense bf16 rows (N, H+2, W*Cin)
    x_nhwc = jnp.transpose(x_nchw, (0, 2, 3, 1))
    xp = jnp.pad(x_nhwc, ((0, 0), (1, 1), (0, 0), (0, 0)))
    xp = xp.reshape(N, H + 2, W * Cin).astype(jnp.bfloat16)

    w1b = _banded_weights(w1, W).astype(jnp.bfloat16)          # (3, W*Cin,  W*Cout)
    w2b = _banded_weights(w2, W).astype(jnp.bfloat16)          # (3, W*Cout, W*Cout)

    g1r = jnp.tile(g1, W).reshape(1, W * Cout)
    be1r = jnp.tile(be1, W).reshape(1, W * Cout)
    g2r = jnp.tile(g2, W).reshape(1, W * Cout)
    be2r = jnp.tile(be2, W).reshape(1, W * Cout)

    kernel = functools.partial(_double_conv_kernel, H=H, W=W, Cout=Cout)
    full = lambda s: pl.BlockSpec(s, lambda i: (0,) * len(s))

    out = pl.pallas_call(
        kernel,
        out_shape=jax.ShapeDtypeStruct((N, H, W * Cout), jnp.float32),
        grid=(1,),
        in_specs=[
            full(xp.shape), full(w1b.shape), full(w2b.shape),
            full(g1r.shape), full(be1r.shape), full(g2r.shape), full(be2r.shape),
        ],
        out_specs=full((N, H, W * Cout)),
        scratch_shapes=[pltpu.VMEM((N, H + 2, W * Cout), jnp.bfloat16)],
        compiler_params=pltpu.CompilerParams(
            dimension_semantics=("arbitrary",)),
    )(xp, w1b, w2b, g1r, be1r, g2r, be2r)

    # lane-dense slab -> NCHW (wrapper-side layout plumbing only)
    return jnp.transpose(out.reshape(N, H, W, Cout), (0, 3, 1, 2))


def init_params(key, in_ch, out_ch):
    ks = jax.random.split(key, 6)
    # Conv weights/biases in PyTorch layout; biases kept for module parity even
    # though the forward path provably does not need them before training-mode BN.
    w1 = 0.1 * jax.random.normal(ks[0], (out_ch, in_ch, 3, 3), jnp.float32)
    b1 = 0.1 * jax.random.normal(ks[1], (out_ch,), jnp.float32)
    w2 = 0.1 * jax.random.normal(ks[2], (out_ch, out_ch, 3, 3), jnp.float32)
    b2 = 0.1 * jax.random.normal(ks[3], (out_ch,), jnp.float32)
    g1 = 1.0 + 0.05 * jax.random.normal(ks[4], (out_ch,), jnp.float32)
    be1 = jnp.zeros((out_ch,), jnp.float32)
    g2 = 1.0 + 0.05 * jax.random.normal(ks[5], (out_ch,), jnp.float32)
    be2 = jnp.zeros((out_ch,), jnp.float32)
    return (w1, b1, g1, be1, w2, b2, g2, be2)


if __name__ == "__main__":
    key = jax.random.PRNGKey(0)
    k_x, k_p = jax.random.split(key)

    N, Cin, Cout, H, W = 2, 4, 8, 16, 16
    x = jax.random.normal(k_x, (N, Cin, H, W), jnp.float32)
    params = init_params(k_p, Cin, Cout)

    out = double_conv_forward(x, params)
    jax.block_until_ready(out)
    assert out.shape == (N, Cout, H, W), out.shape
    assert bool(jnp.all(jnp.isfinite(out)))
    print("KERNEL_OK")
</pallas_src>

<mosaic_0001>
module attributes {stable_mosaic.version = 11 : i64} {
  func.func @_double_conv_kernel(%arg0: i32, %arg1: memref<2x18x64xbf16, #tpu.memory_space<vmem>>, %arg2: memref<3x64x128xbf16, #tpu.memory_space<vmem>>, %arg3: memref<3x128x128xbf16, #tpu.memory_space<vmem>>, %arg4: memref<1x128xf32, #tpu.memory_space<vmem>>, %arg5: memref<1x128xf32, #tpu.memory_space<vmem>>, %arg6: memref<1x128xf32, #tpu.memory_space<vmem>>, %arg7: memref<1x128xf32, #tpu.memory_space<vmem>>, %arg8: memref<2x16x128xf32, #tpu.memory_space<vmem>>, %arg9: memref<2x18x128xbf16, #tpu.memory_space<vmem>>) attributes {dimension_semantics = [#tpu.dimension_semantics<arbitrary>], iteration_bounds = array<i64: 1>, scalar_prefetch = 0 : i64, scratch_operands = 1 : i64, tpu.core_type = #tpu.core_type<tc>, window_params = [{pipeline_mode = #tpu.pipeline_mode<synchronous>, transform_indices = @transform_0, window_bounds = array<i64: 2, 18, 64>}, {pipeline_mode = #tpu.pipeline_mode<synchronous>, transform_indices = @transform_1, window_bounds = array<i64: 3, 64, 128>}, {pipeline_mode = #tpu.pipeline_mode<synchronous>, transform_indices = @transform_2, window_bounds = array<i64: 3, 128, 128>}, {pipeline_mode = #tpu.pipeline_mode<synchronous>, transform_indices = @transform_3, window_bounds = array<i64: 1, 128>}, {pipeline_mode = #tpu.pipeline_mode<synchronous>, transform_indices = @transform_4, window_bounds = array<i64: 1, 128>}, {pipeline_mode = #tpu.pipeline_mode<synchronous>, transform_indices = @transform_5, window_bounds = array<i64: 1, 128>}, {pipeline_mode = #tpu.pipeline_mode<synchronous>, transform_indices = @transform_6, window_bounds = array<i64: 1, 128>}, {pipeline_mode = #tpu.pipeline_mode<synchronous>, transform_indices = @transform_7, window_bounds = array<i64: 2, 16, 128>}]} {
    %c0 = arith.constant 0 : index
    %c0_0 = arith.constant 0 : index
    %c0_1 = arith.constant 0 : index
    %0 = vector.load %arg1[%c0, %c0_0, %c0_1] : memref<2x18x64xbf16, #tpu.memory_space<vmem>>, vector<2x18x64xbf16>
    %1 = vector.shape_cast %0 : vector<2x18x64xbf16> to vector<36x64xbf16>
    %cst = arith.constant 0.000000e+00 : f32
    %2 = vector.broadcast %cst : f32 to vector<2x16x128xf32>
    %c0_2 = arith.constant 0 : index
    %c0_3 = arith.constant 0 : index
    %c0_4 = arith.constant 0 : index
    %3 = vector.load %arg2[%c0_2, %c0_3, %c0_4] : memref<3x64x128xbf16, #tpu.memory_space<vmem>>, vector<1x64x128xbf16>
    %4 = vector.shape_cast %3 : vector<1x64x128xbf16> to vector<64x128xbf16>
    %cst_5 = arith.constant dense<0.000000e+00> : vector<36x128xf32>
    %5 = tpu.matmul %1, %4, %cst_5 {dimension_numbers = #tpu.dot_dimension_numbers<[1], [0], [0], [1], [0, 0, 1, 1], [], []>} : vector<36x64xbf16>, vector<64x128xbf16>, vector<36x128xf32> -> vector<36x128xf32>
    %6 = vector.shape_cast %5 : vector<36x128xf32> to vector<2x18x128xf32>
    %7 = vector.extract_strided_slice %6 {offsets = [0, 0, 0], sizes = [2, 16, 128], strides = [1, 1, 1]} : vector<2x18x128xf32> to vector<2x16x128xf32>
    %8 = arith.addf %2, %7 : vector<2x16x128xf32>
    %c1 = arith.constant 1 : index
    %c0_6 = arith.constant 0 : index
    %c0_7 = arith.constant 0 : index
    %9 = vector.load %arg2[%c1, %c0_6, %c0_7] : memref<3x64x128xbf16, #tpu.memory_space<vmem>>, vector<1x64x128xbf16>
    %10 = vector.shape_cast %9 : vector<1x64x128xbf16> to vector<64x128xbf16>
    %cst_8 = arith.constant dense<0.000000e+00> : vector<36x128xf32>
    %11 = tpu.matmul %1, %10, %cst_8 {dimension_numbers = #tpu.dot_dimension_numbers<[1], [0], [0], [1], [0, 0, 1, 1], [], []>} : vector<36x64xbf16>, vector<64x128xbf16>, vector<36x128xf32> -> vector<36x128xf32>
    %12 = vector.shape_cast %11 : vector<36x128xf32> to vector<2x18x128xf32>
    %13 = vector.extract_strided_slice %12 {offsets = [0, 1, 0], sizes = [2, 16, 128], strides = [1, 1, 1]} : vector<2x18x128xf32> to vector<2x16x128xf32>
    %14 = arith.addf %8, %13 : vector<2x16x128xf32>
    %c2 = arith.constant 2 : index
    %c0_9 = arith.constant 0 : index
    %c0_10 = arith.constant 0 : index
    %15 = vector.load %arg2[%c2, %c0_9, %c0_10] : memref<3x64x128xbf16, #tpu.memory_space<vmem>>, vector<1x64x128xbf16>
    %16 = vector.shape_cast %15 : vector<1x64x128xbf16> to vector<64x128xbf16>
    %cst_11 = arith.constant dense<0.000000e+00> : vector<36x128xf32>
    %17 = tpu.matmul %1, %16, %cst_11 {dimension_numbers = #tpu.dot_dimension_numbers<[1], [0], [0], [1], [0, 0, 1, 1], [], []>} : vector<36x64xbf16>, vector<64x128xbf16>, vector<36x128xf32> -> vector<36x128xf32>
    %18 = vector.shape_cast %17 : vector<36x128xf32> to vector<2x18x128xf32>
    %19 = vector.extract_strided_slice %18 {offsets = [0, 2, 0], sizes = [2, 16, 128], strides = [1, 1, 1]} : vector<2x18x128xf32> to vector<2x16x128xf32>
    %20 = arith.addf %14, %19 : vector<2x16x128xf32>
    %21 = vector.shape_cast %20 : vector<2x16x128xf32> to vector<32x128xf32>
    %cst_12 = arith.constant dense<0.000000e+00> : vector<128xf32>
    %22 = vector.multi_reduction <add>, %21, %cst_12 [0] : vector<32x128xf32> to vector<128xf32>
    %23 = vector.shape_cast %22 : vector<128xf32> to vector<1x128xf32>
    %c8_i32 = arith.constant 8 : i32
    %24 = tpu.dynamic_rotate %23 by %c8_i32 dim 1 : vector<1x128xf32>, i32 -> vector<1x128xf32>
    %25 = arith.addf %23, %24 : vector<1x128xf32>
    %c16_i32 = arith.constant 16 : i32
    %26 = tpu.dynamic_rotate %25 by %c16_i32 dim 1 : vector<1x128xf32>, i32 -> vector<1x128xf32>
    %27 = arith.addf %25, %26 : vector<1x128xf32>
    %c32_i32 = arith.constant 32 : i32
    %28 = tpu.dynamic_rotate %27 by %c32_i32 dim 1 : vector<1x128xf32>, i32 -> vector<1x128xf32>
    %29 = arith.addf %27, %28 : vector<1x128xf32>
    %c64_i32 = arith.constant 64 : i32
    %30 = tpu.dynamic_rotate %29 by %c64_i32 dim 1 : vector<1x128xf32>, i32 -> vector<1x128xf32>
    %31 = arith.addf %29, %30 : vector<1x128xf32>
    %32 = arith.mulf %21, %21 : vector<32x128xf32>
    %cst_13 = arith.constant dense<0.000000e+00> : vector<128xf32>
    %33 = vector.multi_reduction <add>, %32, %cst_13 [0] : vector<32x128xf32> to vector<128xf32>
    %34 = vector.shape_cast %33 : vector<128xf32> to vector<1x128xf32>
    %c8_i32_14 = arith.constant 8 : i32
    %35 = tpu.dynamic_rotate %34 by %c8_i32_14 dim 1 : vector<1x128xf32>, i32 -> vector<1x128xf32>
    %36 = arith.addf %34, %35 : vector<1x128xf32>
    %c16_i32_15 = arith.constant 16 : i32
    %37 = tpu.dynamic_rotate %36 by %c16_i32_15 dim 1 : vector<1x128xf32>, i32 -> vector<1x128xf32>
    %38 = arith.addf %36, %37 : vector<1x128xf32>
    %c32_i32_16 = arith.constant 32 : i32
    %39 = tpu.dynamic_rotate %38 by %c32_i32_16 dim 1 : vector<1x128xf32>, i32 -> vector<1x128xf32>
    %40 = arith.addf %38, %39 : vector<1x128xf32>
    %c64_i32_17 = arith.constant 64 : i32
    %41 = tpu.dynamic_rotate %40 by %c64_i32_17 dim 1 : vector<1x128xf32>, i32 -> vector<1x128xf32>
    %42 = arith.addf %40, %41 : vector<1x128xf32>
    %cst_18 = arith.constant 5.120000e+02 : f32
    %43 = vector.broadcast %cst_18 : f32 to vector<1x128xf32>
    %44 = arith.divf %31, %43 : vector<1x128xf32>
    %cst_19 = arith.constant 5.120000e+02 : f32
    %45 = vector.broadcast %cst_19 : f32 to vector<1x128xf32>
    %46 = arith.divf %42, %45 : vector<1x128xf32>
    %47 = arith.mulf %44, %44 : vector<1x128xf32>
    %48 = arith.subf %46, %47 : vector<1x128xf32>
    %cst_20 = arith.constant 0.000000e+00 : f32
    %49 = vector.broadcast %cst_20 : f32 to vector<1x128xf32>
    %50 = arith.maximumf %48, %49 : vector<1x128xf32>
    %c0_21 = arith.constant 0 : index
    %c0_22 = arith.constant 0 : index
    %51 = vector.load %arg4[%c0_21, %c0_22] : memref<1x128xf32, #tpu.memory_space<vmem>>, vector<1x128xf32>
    %cst_23 = arith.constant 9.99999974E-6 : f32
    %52 = vector.broadcast %cst_23 : f32 to vector<1x128xf32>
    %53 = arith.addf %50, %52 : vector<1x128xf32>
    %54 = math.rsqrt %53 : vector<1x128xf32>
    %55 = arith.mulf %51, %54 : vector<1x128xf32>
    %c0_24 = arith.constant 0 : index
    %c0_25 = arith.constant 0 : index
    %56 = vector.load %arg5[%c0_24, %c0_25] : memref<1x128xf32, #tpu.memory_space<vmem>>, vector<1x128xf32>
    %57 = arith.mulf %44, %55 : vector<1x128xf32>
    %58 = arith.subf %56, %57 : vector<1x128xf32>
    %59 = vector.shape_cast %55 : vector<1x128xf32> to vector<1x1x128xf32>
    %60 = vector.broadcast %59 : vector<1x1x128xf32> to vector<2x16x128xf32>
    %61 = arith.mulf %20, %60 : vector<2x16x128xf32>
    %62 = vector.shape_cast %58 : vector<1x128xf32> to vector<1x1x128xf32>
    %63 = vector.broadcast %62 : vector<1x1x128xf32> to vector<2x16x128xf32>
    %64 = arith.addf %61, %63 : vector<2x16x128xf32>
    %cst_26 = arith.constant 0.000000e+00 : f32
    %65 = vector.broadcast %cst_26 : f32 to vector<2x16x128xf32>
    %66 = arith.maximumf %64, %65 : vector<2x16x128xf32>
    %cst_27 = arith.constant 0.000000e+00 : bf16
    %67 = vector.broadcast %cst_27 : bf16 to vector<2x1x128xbf16>
    %c0_28 = arith.constant 0 : index
    %c0_29 = arith.constant 0 : index
    %c0_30 = arith.constant 0 : index
    %68 = vector.load %arg9[%c0_28, %c0_29, %c0_30] : memref<2x18x128xbf16, #tpu.memory_space<vmem>>, vector<2x1x128xbf16>
    tpu.vector_store %arg9[%c0_28, %c0_29, %c0_30], %67 {strides = array<i32>} : memref<2x18x128xbf16, #tpu.memory_space<vmem>>, vector<2x1x128xbf16>,
    %c0_31 = arith.constant 0 : index
    %c17 = arith.constant 17 : index
    %c0_32 = arith.constant 0 : index
    %69 = vector.load %arg9[%c0_31, %c17, %c0_32] : memref<2x18x128xbf16, #tpu.memory_space<vmem>>, vector<2x1x128xbf16>
    tpu.vector_store %arg9[%c0_31, %c17, %c0_32], %67 {strides = array<i32>} : memref<2x18x128xbf16, #tpu.memory_space<vmem>>, vector<2x1x128xbf16>,
    %70 = arith.truncf %66 : vector<2x16x128xf32> to vector<2x16x128xbf16>
    %c0_33 = arith.constant 0 : index
    %c1_34 = arith.constant 1 : index
    %c0_35 = arith.constant 0 : index
    %71 = vector.load %arg9[%c0_33, %c1_34, %c0_35] : memref<2x18x128xbf16, #tpu.memory_space<vmem>>, vector<2x16x128xbf16>
    tpu.vector_store %arg9[%c0_33, %c1_34, %c0_35], %70 {strides = array<i32>} : memref<2x18x128xbf16, #tpu.memory_space<vmem>>, vector<2x16x128xbf16>,
    %c0_36 = arith.constant 0 : index
    %c0_37 = arith.constant 0 : index
    %c0_38 = arith.constant 0 : index
    %72 = vector.load %arg9[%c0_36, %c0_37, %c0_38] : memref<2x18x128xbf16, #tpu.memory_space<vmem>>, vector<2x18x128xbf16>
    %73 = vector.shape_cast %72 : vector<2x18x128xbf16> to vector<36x128xbf16>
    %cst_39 = arith.constant 0.000000e+00 : f32
    %74 = vector.broadcast %cst_39 : f32 to vector<2x16x128xf32>
    %c0_40 = arith.constant 0 : index
    %c0_41 = arith.constant 0 : index
    %c0_42 = arith.constant 0 : index
    %75 = vector.load %arg3[%c0_40, %c0_41, %c0_42] : memref<3x128x128xbf16, #tpu.memory_space<vmem>>, vector<1x128x128xbf16>
    %76 = vector.shape_cast %75 : vector<1x128x128xbf16> to vector<128x128xbf16>
    %cst_43 = arith.constant dense<0.000000e+00> : vector<36x128xf32>
    %77 = tpu.matmul %73, %76, %cst_43 {dimension_numbers = #tpu.dot_dimension_numbers<[1], [0], [0], [1], [0, 0, 1, 1], [], []>} : vector<36x128xbf16>, vector<128x128xbf16>, vector<36x128xf32> -> vector<36x128xf32>
    %78 = vector.shape_cast %77 : vector<36x128xf32> to vector<2x18x128xf32>
    %79 = vector.extract_strided_slice %78 {offsets = [0, 0, 0], sizes = [2, 16, 128], strides = [1, 1, 1]} : vector<2x18x128xf32> to vector<2x16x128xf32>
    %80 = arith.addf %74, %79 : vector<2x16x128xf32>
    %c1_44 = arith.constant 1 : index
    %c0_45 = arith.constant 0 : index
    %c0_46 = arith.constant 0 : index
    %81 = vector.load %arg3[%c1_44, %c0_45, %c0_46] : memref<3x128x128xbf16, #tpu.memory_space<vmem>>, vector<1x128x128xbf16>
    %82 = vector.shape_cast %81 : vector<1x128x128xbf16> to vector<128x128xbf16>
    %cst_47 = arith.constant dense<0.000000e+00> : vector<36x128xf32>
    %83 = tpu.matmul %73, %82, %cst_47 {dimension_numbers = #tpu.dot_dimension_numbers<[1], [0], [0], [1], [0, 0, 1, 1], [], []>} : vector<36x128xbf16>, vector<128x128xbf16>, vector<36x128xf32> -> vector<36x128xf32>
    %84 = vector.shape_cast %83 : vector<36x128xf32> to vector<2x18x128xf32>
    %85 = vector.extract_strided_slice %84 {offsets = [0, 1, 0], sizes = [2, 16, 128], strides = [1, 1, 1]} : vector<2x18x128xf32> to vector<2x16x128xf32>
    %86 = arith.addf %80, %85 : vector<2x16x128xf32>
    %c2_48 = arith.constant 2 : index
    %c0_49 = arith.constant 0 : index
    %c0_50 = arith.constant 0 : index
    %87 = vector.load %arg3[%c2_48, %c0_49, %c0_50] : memref<3x128x128xbf16, #tpu.memory_space<vmem>>, vector<1x128x128xbf16>
    %88 = vector.shape_cast %87 : vector<1x128x128xbf16> to vector<128x128xbf16>
    %cst_51 = arith.constant dense<0.000000e+00> : vector<36x128xf32>
    %89 = tpu.matmul %73, %88, %cst_51 {dimension_numbers = #tpu.dot_dimension_numbers<[1], [0], [0], [1], [0, 0, 1, 1], [], []>} : vector<36x128xbf16>, vector<128x128xbf16>, vector<36x128xf32> -> vector<36x128xf32>
    %90 = vector.shape_cast %89 : vector<36x128xf32> to vector<2x18x128xf32>
    %91 = vector.extract_strided_slice %90 {offsets = [0, 2, 0], sizes = [2, 16, 128], strides = [1, 1, 1]} : vector<2x18x128xf32> to vector<2x16x128xf32>
    %92 = arith.addf %86, %91 : vector<2x16x128xf32>
    %93 = vector.shape_cast %92 : vector<2x16x128xf32> to vector<32x128xf32>
    %cst_52 = arith.constant dense<0.000000e+00> : vector<128xf32>
    %94 = vector.multi_reduction <add>, %93, %cst_52 [0] : vector<32x128xf32> to vector<128xf32>
    %95 = vector.shape_cast %94 : vector<128xf32> to vector<1x128xf32>
    %c8_i32_53 = arith.constant 8 : i32
    %96 = tpu.dynamic_rotate %95 by %c8_i32_53 dim 1 : vector<1x128xf32>, i32 -> vector<1x128xf32>
    %97 = arith.addf %95, %96 : vector<1x128xf32>
    %c16_i32_54 = arith.constant 16 : i32
    %98 = tpu.dynamic_rotate %97 by %c16_i32_54 dim 1 : vector<1x128xf32>, i32 -> vector<1x128xf32>
    %99 = arith.addf %97, %98 : vector<1x128xf32>
    %c32_i32_55 = arith.constant 32 : i32
    %100 = tpu.dynamic_rotate %99 by %c32_i32_55 dim 1 : vector<1x128xf32>, i32 -> vector<1x128xf32>
    %101 = arith.addf %99, %100 : vector<1x128xf32>
    %c64_i32_56 = arith.constant 64 : i32
    %102 = tpu.dynamic_rotate %101 by %c64_i32_56 dim 1 : vector<1x128xf32>, i32 -> vector<1x128xf32>
    %103 = arith.addf %101, %102 : vector<1x128xf32>
    %104 = arith.mulf %93, %93 : vector<32x128xf32>
    %cst_57 = arith.constant dense<0.000000e+00> : vector<128xf32>
    %105 = vector.multi_reduction <add>, %104, %cst_57 [0] : vector<32x128xf32> to vector<128xf32>
    %106 = vector.shape_cast %105 : vector<128xf32> to vector<1x128xf32>
    %c8_i32_58 = arith.constant 8 : i32
    %107 = tpu.dynamic_rotate %106 by %c8_i32_58 dim 1 : vector<1x128xf32>, i32 -> vector<1x128xf32>
    %108 = arith.addf %106, %107 : vector<1x128xf32>
    %c16_i32_59 = arith.constant 16 : i32
    %109 = tpu.dynamic_rotate %108 by %c16_i32_59 dim 1 : vector<1x128xf32>, i32 -> vector<1x128xf32>
    %110 = arith.addf %108, %109 : vector<1x128xf32>
    %c32_i32_60 = arith.constant 32 : i32
    %111 = tpu.dynamic_rotate %110 by %c32_i32_60 dim 1 : vector<1x128xf32>, i32 -> vector<1x128xf32>
    %112 = arith.addf %110, %111 : vector<1x128xf32>
    %c64_i32_61 = arith.constant 64 : i32
    %113 = tpu.dynamic_rotate %112 by %c64_i32_61 dim 1 : vector<1x128xf32>, i32 -> vector<1x128xf32>
    %114 = arith.addf %112, %113 : vector<1x128xf32>
    %cst_62 = arith.constant 5.120000e+02 : f32
    %115 = vector.broadcast %cst_62 : f32 to vector<1x128xf32>
    %116 = arith.divf %103, %115 : vector<1x128xf32>
    %cst_63 = arith.constant 5.120000e+02 : f32
    %117 = vector.broadcast %cst_63 : f32 to vector<1x128xf32>
    %118 = arith.divf %114, %117 : vector<1x128xf32>
    %119 = arith.mulf %116, %116 : vector<1x128xf32>
    %120 = arith.subf %118, %119 : vector<1x128xf32>
    %cst_64 = arith.constant 0.000000e+00 : f32
    %121 = vector.broadcast %cst_64 : f32 to vector<1x128xf32>
    %122 = arith.maximumf %120, %121 : vector<1x128xf32>
    %c0_65 = arith.constant 0 : index
    %c0_66 = arith.constant 0 : index
    %123 = vector.load %arg6[%c0_65, %c0_66] : memref<1x128xf32, #tpu.memory_space<vmem>>, vector<1x128xf32>
    %cst_67 = arith.constant 9.99999974E-6 : f32
    %124 = vector.broadcast %cst_67 : f32 to vector<1x128xf32>
    %125 = arith.addf %122, %124 : vector<1x128xf32>
    %126 = math.rsqrt %125 : vector<1x128xf32>
    %127 = arith.mulf %123, %126 : vector<1x128xf32>
    %c0_68 = arith.constant 0 : index
    %c0_69 = arith.constant 0 : index
    %128 = vector.load %arg7[%c0_68, %c0_69] : memref<1x128xf32, #tpu.memory_space<vmem>>, vector<1x128xf32>
    %129 = arith.mulf %116, %127 : vector<1x128xf32>
    %130 = arith.subf %128, %129 : vector<1x128xf32>
    %131 = vector.shape_cast %127 : vector<1x128xf32> to vector<1x1x128xf32>
    %132 = vector.broadcast %131 : vector<1x1x128xf32> to vector<2x16x128xf32>
    %133 = arith.mulf %92, %132 : vector<2x16x128xf32>
    %134 = vector.shape_cast %130 : vector<1x128xf32> to vector<1x1x128xf32>
    %135 = vector.broadcast %134 : vector<1x1x128xf32> to vector<2x16x128xf32>
    %136 = arith.addf %133, %135 : vector<2x16x128xf32>
    %cst_70 = arith.constant 0.000000e+00 : f32
    %137 = vector.broadcast %cst_70 : f32 to vector<2x16x128xf32>
    %138 = arith.maximumf %136, %137 : vector<2x16x128xf32>
    %c0_71 = arith.constant 0 : index
    %c0_72 = arith.constant 0 : index
    %c0_73 = arith.constant 0 : index
    %139 = vector.load %arg8[%c0_71, %c0_72, %c0_73] : memref<2x16x128xf32, #tpu.memory_space<vmem>>, vector<2x16x128xf32>
    tpu.vector_store %arg8[%c0_71, %c0_72, %c0_73], %138 {strides = array<i32>} : memref<2x16x128xf32, #tpu.memory_space<vmem>>, vector<2x16x128xf32>,
    return
  }
  func.func @transform_0(%arg0: i32) -> (i32, i32, i32) {
    %c0_i32 = arith.constant 0 : i32
    %c0_i32_0 = arith.constant 0 : i32
    %c0_i32_1 = arith.constant 0 : i32
    %c0_i32_2 = arith.constant 0 : i32
    return %c0_i32, %c0_i32_0, %c0_i32_1 : i32, i32, i32
  }
  func.func @transform_1(%arg0: i32) -> (i32, i32, i32) {
    %c0_i32 = arith.constant 0 : i32
    %c0_i32_0 = arith.constant 0 : i32
    %c0_i32_1 = arith.constant 0 : i32
    %c0_i32_2 = arith.constant 0 : i32
    return %c0_i32, %c0_i32_0, %c0_i32_1 : i32, i32, i32
  }
  func.func @transform_2(%arg0: i32) -> (i32, i32, i32) {
    %c0_i32 = arith.constant 0 : i32
    %c0_i32_0 = arith.constant 0 : i32
    %c0_i32_1 = arith.constant 0 : i32
    %c0_i32_2 = arith.constant 0 : i32
    return %c0_i32, %c0_i32_0, %c0_i32_1 : i32, i32, i32
  }
  func.func @transform_3(%arg0: i32) -> (i32, i32) {
    %c0_i32 = arith.constant 0 : i32
    %c0_i32_0 = arith.constant 0 : i32
    %c0_i32_1 = arith.constant 0 : i32
    return %c0_i32, %c0_i32_0 : i32, i32
  }
  func.func @transform_4(%arg0: i32) -> (i32, i32) {
    %c0_i32 = arith.constant 0 : i32
    %c0_i32_0 = arith.constant 0 : i32
    %c0_i32_1 = arith.constant 0 : i32
    return %c0_i32, %c0_i32_0 : i32, i32
  }
  func.func @transform_5(%arg0: i32) -> (i32, i32) {
    %c0_i32 = arith.constant 0 : i32
    %c0_i32_0 = arith.constant 0 : i32
    %c0_i32_1 = arith.constant 0 : i32
    return %c0_i32, %c0_i32_0 : i32, i32
  }
  func.func @transform_6(%arg0: i32) -> (i32, i32) {
    %c0_i32 = arith.constant 0 : i32
    %c0_i32_0 = arith.constant 0 : i32
    %c0_i32_1 = arith.constant 0 : i32
    return %c0_i32, %c0_i32_0 : i32, i32
  }
  func.func @transform_7(%arg0: i32) -> (i32, i32, i32) {
    %c0_i32 = arith.constant 0 : i32
    %c0_i32_0 = arith.constant 0 : i32
    %c0_i32_1 = arith.constant 0 : i32
    %c0_i32_2 = arith.constant 0 : i32
    return %c0_i32, %c0_i32_0, %c0_i32_1 : i32, i32, i32
  }
}

</mosaic_0001>

<bundles_post_ra>
// kernel: tile.23
= control target key start
LH: loop header
LB: loop body
LE: loop exit
PB: predicated region body
PF: predicated region fallthrough
CT: control target
= control target key end

     0   :  { %s28_s0 = inlined_call_operand.vmem [shape: f32[8], index: 0, kind: input, shape index: {}]   ;;  %s29_s1 = inlined_call_operand.vmem [shape: f32[16,8], index: 1, kind: output, shape index: {}]  }
   0x1   :  { %v4_v0 = vld [vmem:[%s28_s0] ss:$0 sm:$0xff] }
   0x2   :  { %5 = vst [vmem:[%s29_s1] sm:$0xff] %v4_v0  ;;  %8 = vst [vmem:[%s29_s1 + $0x8] sm:$0xff] %v4_v0 }

// kernel: tile.24
= control target key start
LH: loop header
LB: loop body
LE: loop exit
PB: predicated region body
PF: predicated region fallthrough
CT: control target
= control target key end

     0   :  { %s131_s10 = smov 120   ;;  %s132_s11 = smov 104   ;;  %vm3_vm0 = vcmask 64512   ;;  %vm9_vm1 = vcmask 1048512   ;;  %vm15_vm2 = vcmask 982912   ;;  %vm21_vm3 = vcmask 917312   ;;  %s207_s0 = inlined_call_operand.vmem [shape: f32[16,8], index: 0, kind: input, shape index: {}]   ;;  %s208_s1 = inlined_call_operand.vmem [shape: f32[1,128], index: 1, kind: output, shape index: {}]  }
   0x1   :  { %v101_v0 = vld [vmem:[%s207_s0 + $0xf] sm:$0x1]   ;;  %v103_v1 = vld [vmem:[%s207_s0 + $0xd] sm:$0x1]   ;;  %v102_v2 = vld [vmem:[%s207_s0 + $0xe] sm:$0x1]  }
   0x2   :  { %7 = vrot.lane.b32.xlu0 %v101_v0, %s131_s10  ;;  %19 = vrot.lane.b32.xlu1 %v103_v1, %s132_s11  ;;  %v104_v3 = vld [vmem:[%s207_s0 + $0xc] sm:$0x1]   ;;  %s133_s16 = smov 112   ;;  %s134_s17 = smov 96   ;;  %v105_v4 = vld [vmem:[%s207_s0 + $0xb] sm:$0x1]  }
   0x3   :  { %v106_v5 = vld [vmem:[%s207_s0 + $0xa] sm:$0x1]   ;;  %v2_v6 = vld [vmem:[%s207_s0] sm:$0x1]   ;;  %s135_s24 = smov 88   ;;  %s136_s25 = smov 80  }
   0x4   :  { %4 = vst.msk [vmem:[#allocation0] sm:$0x1] %vm3_vm0, %v2_v6   ;;  %v107_v7 = vld [vmem:[%s207_s0 + $0x9] sm:$0x1]   ;;  %v108_v8 = vld [vmem:[%s207_s0 + $0x8] sm:$0x1]  }
   0x5   :  { %s137_s30 = smov 72   ;;  %s138_s2 = smov 64   ;;  %v109_v9 = vld [vmem:[%s207_s0 + $0x7] sm:$0x1]   ;;  %v110_v10 = vld [vmem:[%s207_s0 + $0x6] sm:$0x1]  }
   0x6   :  { %13 = vrot.lane.b32.xlu0 %v102_v2, %s133_s16  ;;  %25 = vrot.lane.b32.xlu1 %v104_v3, %s134_s17  ;;  %s139_s7 = smov 56   ;;  %s140_s8 = smov 48   ;;  %v111_v11 = vld [vmem:[%s207_s0 + $0x5] sm:$0x1]   ;;  %v112_v12 = vld [vmem:[%s207_s0 + $0x4] sm:$0x1]  }
   0x7   :  { %s141_s13 = smov 40   ;;  %s142_s14 = smov 32   ;;  %v113_v13 = vld [vmem:[%s207_s0 + $0x3] sm:$0x1]   ;;  %v114_v14 = vld [vmem:[%s207_s0 + $0x2] sm:$0x1]  }
   0x8   :  { %s143_s19 = smov 24   ;;  %s144_s20 = smov 16   ;;  %v115_v15 = vld [vmem:[%s207_s0 + $0x1] sm:$0x1]   ;;  %vm27_vm4 = vcmask 851712   ;;  %vm33_vm5 = vcmask 786112  }
   0x9   :  { %s145_s0 = smov 8   ;;  %vm39_vm6 = vcmask 720512   ;;  %vm45_vm7 = vcmask 654912   ;;  %vm51_vm8 = vcmask 589312   ;;  %vm57_vm9 = vcmask 523712  }
   0xa   :  { %31 = vrot.lane.b32.xlu0 %v105_v4, %s135_s24  ;;  %37 = vrot.lane.b32.xlu1 %v106_v5, %s136_s25  ;;  %vm63_vm10 = vcmask 458112   ;;  %vm69_vm11 = vcmask 392512   ;;  %vm75_vm12 = vcmask 326912   ;;  %vm81_vm13 = vcmask 261312  }
   0xb   :  { %vm87_vm14 = vcmask 195712   ;;  %vm93_vm15 = vcmask 130112  }
   0xe   :  { %43 = vrot.lane.b32.xlu0 %v107_v7, %s137_s30  ;;  %49 = vrot.lane.b32.xlu1 %v108_v8, %s138_s2 }
  0x12   :  { %55 = vrot.lane.b32.xlu0 %v109_v9, %s139_s7  ;;  %61 = vrot.lane.b32.xlu1 %v110_v10, %s140_s8 }
  0x16   :  { %67 = vrot.lane.b32.xlu0 %v111_v11, %s141_s13  ;;  %73 = vrot.lane.b32.xlu1 %v112_v12, %s142_s14 }
  0x1a   :  { %79 = vrot.lane.b32.xlu0 %v113_v13, %s143_s19  ;;  %85 = vrot.lane.b32.xlu1 %v114_v14, %s144_s20 }
  0x1e   :  { %91 = vrot.lane.b32.xlu0 %v115_v15, %s145_s0 }
  0x74   :  { %v8_v16 = vpop.permute.xlu0 %7   ;;  %v20_v17 = vpop.permute.xlu1 %19  }
  0x75   :  { %10 = vst.msk [vmem:[#allocation0] sm:$0x1] %vm9_vm1, %v8_v16  }
  0x78   :  { %v14_v18 = vpop.permute.xlu0 %13   ;;  %v26_v19 = vpop.permute.xlu1 %25  }
  0x79   :  { %16 = vst.msk [vmem:[#allocation0] sm:$0x1] %vm15_vm2, %v14_v18  }
  0x7a   :  { %22 = vst.msk [vmem:[#allocation0] sm:$0x1] %vm21_vm3, %v20_v17  }
  0x7b   :  { %28 = vst.msk [vmem:[#allocation0] sm:$0x1] %vm27_vm4, %v26_v19  }
  0x7c   :  { %v32_v20 = vpop.permute.xlu0 %31   ;;  %v38_v21 = vpop.permute.xlu1 %37  }
  0x7d   :  { %34 = vst.msk [vmem:[#allocation0] sm:$0x1] %vm33_vm5, %v32_v20  }
  0x7e   :  { %40 = vst.msk [vmem:[#allocation0] sm:$0x1] %vm39_vm6, %v38_v21  }
  0x80   :  { %v44_v22 = vpop.permute.xlu0 %43   ;;  %v50_v23 = vpop.permute.xlu1 %49  }
  0x81   :  { %46 = vst.msk [vmem:[#allocation0] sm:$0x1] %vm45_vm7, %v44_v22  }
  0x82   :  { %52 = vst.msk [vmem:[#allocation0] sm:$0x1] %vm51_vm8, %v50_v23  }
  0x84   :  { %v56_v24 = vpop.permute.xlu0 %55   ;;  %v62_v25 = vpop.permute.xlu1 %61  }
  0x85   :  { %58 = vst.msk [vmem:[#allocation0] sm:$0x1] %vm57_vm9, %v56_v24  }
  0x86   :  { %64 = vst.msk [vmem:[#allocation0] sm:$0x1] %vm63_vm10, %v62_v25  }
  0x88   :  { %v68_v26 = vpop.permute.xlu0 %67   ;;  %v74_v27 = vpop.permute.xlu1 %73  }
  0x89   :  { %70 = vst.msk [vmem:[#allocation0] sm:$0x1] %vm69_vm11, %v68_v26  }
  0x8a   :  { %76 = vst.msk [vmem:[#allocation0] sm:$0x1] %vm75_vm12, %v74_v27  }
  0x8c   :  { %v80_v28 = vpop.permute.xlu0 %79   ;;  %v86_v29 = vpop.permute.xlu1 %85  }
  0x8d   :  { %82 = vst.msk [vmem:[#allocation0] sm:$0x1] %vm81_vm13, %v80_v28  }
  0x8e   :  { %88 = vst.msk [vmem:[#allocation0] sm:$0x1] %vm87_vm14, %v86_v29  }
  0x90   :  { %v92_v30 = vpop.permute.xlu0 %91  }
  0x91   :  { %94 = vst.msk [vmem:[#allocation0] sm:$0x1] %vm93_vm15, %v92_v30  }
  0x98   :  { %v98_v31 = vld [vmem:[#allocation0] sm:$0x1] }
  0x99   :  { %100 = vst [vmem:[%s208_s1] sm:$0x1] %v98_v31 }

// kernel: double_conv_forward.1
= control target key start
LH: loop header
LB: loop body
LE: loop exit
PB: predicated region body
PF: predicated region fallthrough
CT: control target
= control target key end

     0   :  { %v50_v0 = vlaneseq  ;;  %v3278_v1 = vmov 0.0   ;;  %v3279_v3 = vmov 1966171168   ;;  %vm3280_vm0 = vmmov 0   ;;  %s3283_s13 = smov 16   ;;  %s3284_s14 = smov 32   ;;  %s4274_s1 = inlined_call_operand.vmem [shape: bf16[3,64,128], index: 1, kind: input, shape index: {}]   ;;  %s4275_s0 = inlined_call_operand.vmem [shape: bf16[2,18,64], index: 0, kind: input, shape index: {}]   ;;  %s4276_s2 = inlined_call_operand.vmem [shape: bf16[3,128,128], index: 2, kind: input, shape index: {}]   ;;  %s4277_s3 = inlined_call_operand.vmem [shape: f32[1,128], index: 3, kind: input, shape index: {}]   ;;  %s4278_s4 = inlined_call_operand.vmem [shape: f32[1,128], index: 4, kind: input, shape index: {}]   ;;  %s4279_s5 = inlined_call_operand.vmem [shape: f32[1,128], index: 5, kind: input, shape index: {}]   ;;  %s4280_s6 = inlined_call_operand.vmem [shape: f32[1,128], index: 6, kind: input, shape index: {}]   ;;  %s4281_s7 = inlined_call_operand.vmem [shape: f32[2,16,128], index: 7, kind: output, shape index: {}]  }
   0x1   :  { %3086 = vmatprep.subr.bf16.mxu0 %v3278_v1  ;;  %3106 = vmatprep.subr.bf16.mxu1 %v3278_v1  ;;  %v3238_v2 = vld [vmem:[%s4274_s1] sm:$0xff]   ;;  %v48_v4 = vunpack.c.l.s4 %v3279_v3  ;;  %v3240_v7 = vld [vmem:[%s4274_s1 + $0x8] sm:$0xff]   ;;  %v3242_v11 = vld [vmem:[%s4274_s1 + $0x10] sm:$0xff]   ;;  %vm308_vm1 = vcmask 523264   ;;  %vm656_vm2 = vcmask 1040384   ;;  %vm657_vm3 = vcmask 1042434  }
   0x2   :  { %v3239_v5 = vld [vmem:[%s4274_s1 + $0x20] sm:$0xff]   ;;  %3094 = vmatprep.mubr.msk.bf16.mxu0 %vm3280_vm0, %v3278_v1  ;;  %3114 = vmatprep.mubr.msk.bf16.mxu1 %vm3280_vm0, %v3278_v1  ;;  %v3338_v6 = vshrl.u32 %v50_v0, 7  ;;  %v3241_v9 = vld [vmem:[%s4274_s1 + $0x28] sm:$0xff]   ;;  %v3243_v12 = vld [vmem:[%s4274_s1 + $0x30] sm:$0xff]   ;;  %vm659_vm5 = vcmask 1044484   ;;  %vm661_vm7 = vcmask 1046534  }
   0x3   :  { %3087 = vmatpush3.bf16.msra.mxu0 %v3238_v2  ;;  %v49_v8 = vunpack.c.0.s8 %v48_v4  ;;  %3107 = vmatpush3.bf16.msra.mxu1 %v3239_v5  ;;  %v2911_v13 = vld.sshfl [vmem:[%s4275_s0] sm:$0x33 pattern:$0x75316420]  ;;  %v3244_v17 = vld [vmem:[%s4274_s1 + $0x18] sm:$0xff]   ;;  %v3247_v62 = vld [vmem:[%s4274_s1 + $0x48] sm:$0xff]  }
   0x4   :  { %3088 = vmatprep.subr.bf16.mxu0 %v3278_v1  ;;  %3108 = vmatprep.subr.bf16.mxu1 %v3278_v1  ;;  %v2912_v14 = vld.sshfl [vmem:[%s4275_s0 + $0x4] sm:$0x33 pattern:$0x75316420]  ;;  %v46_v15 = vcombine.high %v2911_v13, %v2911_v13  ;;  %v3245_v20 = vld [vmem:[%s4274_s1 + $0x38] sm:$0xff]   ;;  %v3248_v5 = vld [vmem:[%s4274_s1 + $0x50] sm:$0xff]  }
   0x5   :  { %v3349_v10 = vsub.s32 %v49_v8, %v3338_v6  ;;  %v70_v18 = vcombine.high %v2912_v14, %v2912_v14  ;;  %v2913_v23 = vld.sshfl [vmem:[%s4275_s0 + $0x8] sm:$0x1 pattern:$0x75316420]  ;;  %v3246_v53 = vld [vmem:[%s4274_s1 + $0x40] sm:$0xff]   ;;  %v3249_v8 = vld [vmem:[%s4274_s1 + $0x58] sm:$0xff]  }
   0x6   :  { %v2914_v26 = vld.sshfl [vmem:[%s4275_s0 + $0xc] sm:$0x33 pattern:$0x75316420]  ;;  %vm658_vm4 = vmor %vm656_vm2, %vm657_vm3  ;;  %s3282_s1 = smov 8   ;;  %s3285_s15 = smov 64  }
   0x7   :  { %3089 = vmatpush3.bf16.msra.mxu0 %v3240_v7  ;;  %3109 = vmatpush3.bf16.msra.mxu1 %v3241_v9  ;;  %v53_v16 = vrot.slane %v2911_v13, %v3349_v10  ;;  %v77_v19 = vrot.slane %v2912_v14, %v3349_v10  ;;  %v60_v21 = vrot.slane %v46_v15, %v3349_v10  ;;  %v2915_v30 = vld.sshfl [vmem:[%s4275_s0 + $0x10] sm:$0x33 pattern:$0x75316420]  ;;  %vm3473_vm6 = vmor %vm658_vm4, %vm659_vm5  ;;  %vm1294_vm9 = vsmask.f32 256 }
   0x8   :  { %3090 = vmatprep.subr.bf16.mxu0 %v3278_v1  ;;  %3110 = vmatprep.subr.bf16.mxu1 %v3278_v1  ;;  %v84_v22 = vrot.slane %v70_v18, %v3349_v10  ;;  %v100_v27 = vrot.slane %v2913_v23, %v3349_v10  ;;  %v108_v31 = vcombine.high %v2914_v26, %v2914_v26  ;;  %v2916_v55 = vld.sshfl [vmem:[%s4275_s0 + $0x14] sm:$0x1 pattern:$0x75316420]  ;;  %vm3502_vm8 = vmor %vm3473_vm6, %vm661_vm7  ;;  %vm1302_vm11 = vsmask.f32 7938 }
   0x9   :  { %v171_v24 = vcombine.low %v53_v16, %v60_v21  ;;  %v2917_v25 = vcombine.high %v53_v16, %v60_v21  ;;  %v115_v32 = vrot.slane %v2914_v26, %v3349_v10  ;;  %v132_v35 = vcombine.high %v2915_v30, %v2915_v30  ;;  %vm3740_vm10 = vmand %vm656_vm2, %vm1294_vm9 }
   0xa   :  { %v173_v28 = vcombine.low %v77_v19, %v84_v22  ;;  %v2918_v29 = vcombine.high %v77_v19, %v84_v22  ;;  %v122_v38 = vrot.slane %v108_v31, %v3349_v10  ;;  %v139_v41 = vrot.slane %v2915_v30, %v3349_v10  ;;  %vm3748_vm12 = vmand %vm656_vm2, %vm1302_vm11 }
   0xb   :  { %3091 = vmatpush3.bf16.msra.mxu0 %v3242_v11  ;;  %3111 = vmatpush3.bf16.msra.mxu1 %v3243_v12  ;;  %v181_v33 = vrot.slane %v171_v24, %v3349_v10  ;;  %v188_v34 = vrot.slane %v2917_v25, %v3349_v10  ;;  %v123_v39 = vcombine.high %v115_v32, %v115_v32  ;;  %v3281_v11 = vmov 1983009808  }
   0xc   :  { %3092 = vmatprep.subr.bf16.mxu0 %v3278_v1  ;;  %3112 = vmatprep.subr.bf16.mxu1 %v3278_v1  ;;  %v195_v36 = vrot.slane %v173_v28, %v3349_v10  ;;  %v202_v37 = vrot.slane %v2918_v29, %v3349_v10  ;;  %v146_v42 = vrot.slane %v132_v35, %v3349_v10  ;;  %v381_v12 = vunpack.c.l.s4 %v3281_v11 }
   0xd   :  { %v203_v40 = vcombine.low %v181_v33, %v188_v34  ;;  %v220_v43 = vcombine.low %v100_v27, %v115_v32  ;;  %v124_v45 = vcombine.high %v122_v38, %v122_v38  ;;  %v221_v46 = vcombine.low %v122_v38, %v123_v39 }
   0xe   :  { %v204_v44 = vcombine.low %v195_v36, %v202_v37  ;;  %v147_v48 = vcombine.high %v139_v41, %v139_v41  ;;  %v148_v60 = vcombine.high %v146_v42, %v146_v42  ;;  %v162_v61 = vrot.slane %v2916_v55, %v3349_v10 }
   0xf   :  { %3093 = vmatpush3.bf16.msra.mxu0 %v3244_v17  ;;  %3113 = vmatpush3.bf16.msra.mxu1 %v3245_v20  ;;  %v211_v47 = vrot.slane %v203_v40, %v3349_v10  ;;  %v230_v49 = vrot.slane %v220_v43, %v3349_v10  ;;  %v222_v51 = vcombine.low %v124_v45, %v139_v41  ;;  %v382_v13 = vunpack.c.0.s8 %v381_v12 }
  0x10   :  { %3126 = vmatprep.subr.bf16.mxu0 %v3278_v1  ;;  %3146 = vmatprep.subr.bf16.mxu1 %v3278_v1  ;;  %v218_v50 = vrot.slane %v204_v44, %v3349_v10  ;;  %v237_v52 = vrot.slane %v221_v46, %v3349_v10  ;;  %v223_v54 = vcombine.low %v146_v42, %v147_v48  ;;  %vm1452_vm13 = vcmask 1043456  }
  0x11   :  { %v244_v57 = vrot.slane %v222_v51, %v3349_v10  ;;  %v269_v3 = vcombine.low %v148_v60, %v162_v61  ;;  %v3455_v14 = vsub.s32 %v382_v13, %v3338_v6  ;;  %vm1410_vm14 = vsmask.f32 4368  ;;  %vm3863_vm15 = vmand %vm1452_vm13, %vm1302_vm11 }
  0x12   :  { %v219_v56 = vcombine.low %v211_v47, %v218_v50  ;;  %v252_v58 = vcombine.low %v230_v49, %v237_v52  ;;  %v251_v59 = vrot.slane %v223_v54, %v3349_v10 }
  0x13   :  { %v276_v7 = vrot.slane %v269_v3, %v3349_v10 }
  0x14   :  { %3095 = vmatmul.mubr.msk.bf16.vlgmr.msra.gmra.mrb[0].mxu0 %vm308_vm1, %v219_v56  ;;  %3115 = vmatmul.mubr.msk.bf16.vlgmr.msra.gmra.mrb[0].mxu1 %vm308_vm1, %v219_v56  ;;  %v253_v63 = vcombine.low %v244_v57, %v251_v59  ;;  %v260_v0 = vrot.slane %v252_v58, %v3349_v10 }
  0x15   :  { %3127 = vmatpush3.bf16.msra.mxu0 %v3246_v53  ;;  %3098 = vmatprep.mubr.msk.bf16.mxu0 %vm3280_vm0, %v3278_v1  ;;  %v283_v9 = vrot.slane %v276_v7, %v3349_v10 }
  0x16   :  { %3128 = vmatprep.subr.bf16.mxu0 %v3278_v1  ;;  %3118 = vmatprep.mubr.msk.bf16.mxu1 %vm3280_vm0, %v3278_v1  ;;  %v267_v2 = vrot.slane %v253_v63, %v3349_v10 }
  0x18   :  { %v268_v4 = vcombine.low %v260_v0, %v267_v2 }
  0x19   :  { %3129 = vmatpush3.bf16.msra.mxu0 %v3247_v62 }
  0x1a   :  { %3130 = vmatprep.subr.bf16.mxu0 %v3278_v1 }
  0x1c   :  { %3099 = vmatmul.mubr.msk.bf16.gmra.mrb[4].mxu0 %vm308_vm1, %v268_v4  ;;  %3119 = vmatmul.mubr.msk.bf16.gmra.mrb[4].mxu1 %vm308_vm1, %v268_v4 }
  0x1d   :  { %3131 = vmatpush3.bf16.msra.mxu0 %v3248_v5  ;;  %3102 = vmatprep.mubr.msk.bf16.mxu0 %vm3280_vm0, %v3278_v1 }
  0x1e   :  { %3122 = vmatprep.mubr.msk.bf16.mxu1 %vm3280_vm0, %v3278_v1  ;;  %3132 = vmatprep.subr.bf16.mxu0 %v3278_v1 }
  0x21   :  { %3133 = vmatpush3.bf16.msra.mxu0 %v3249_v8 }
  0x22   :  { %3174 = vmatprep.subr.bf16.mxu0 %v3278_v1 }
  0x24   :  { %3103 = vmatmul.mubr.msk.bf16.gmra.mrb[8].mxu0 %vm308_vm1, %v283_v9  ;;  %3123 = vmatmul.mubr.msk.bf16.gmra.mrb[8].mxu1 %vm308_vm1, %v283_v9 }
  0x25   :  { %3134 = vmatprep.mubr.msk.bf16.mxu0 %vm3280_vm0, %v3278_v1  ;;  %3162 = vmatprep.mubr.msk.bf16.mxu1 %vm3280_vm0, %v3278_v1 }
  0x2c   :  { %3135 = vmatmul.mubr.msk.bf16.vlgmr.msra.gmra.mrb[12].mxu0 %vm308_vm1, %v219_v56 }
  0x2d   :  { %3138 = vmatprep.mubr.msk.bf16.mxu0 %vm3280_vm0, %v3278_v1 }
  0x34   :  { %3139 = vmatmul.mubr.msk.bf16.gmra.mrb[16].mxu0 %vm308_vm1, %v268_v4 }
  0x35   :  { %3142 = vmatprep.mubr.msk.bf16.mxu0 %vm3280_vm0, %v3278_v1 }
  0x3c   :  { %3143 = vmatmul.mubr.msk.bf16.gmra.mrb[20].mxu0 %vm308_vm1, %v283_v9  ;;  %vm3868_vm1 = vmor %vm1294_vm9, %vm1410_vm14 }
  0x3d   :  { %3190 = vmatprep.mubr.msk.bf16.mxu0 %vm3280_vm0, %v3278_v1 }
  0xe7   :  { %v352_v15 = vpop.f32.mrb[0].mxu0  ;;  %v553_v16 = vpop.f32.mrb[0].mxu1 }
  0xe8   :  { %v379_v17 = vcombine.high %v352_v15, %v352_v15  ;;  %v580_v18 = vcombine.high %v553_v16, %v553_v16  ;;  %v587_v19 = vrot.slane %v553_v16, %v3455_v14  ;;  %v3096_v20 = vpop.f32.mrb[1].mxu0  ;;  %v3116_v21 = vpop.f32.mrb[1].mxu1  ;;  %v3459_v22 = vrot.slane %v352_v15, %v3455_v14 }
  0xe9   :  { %v355_v23 = vpop.f32.mrb[2].mxu0  ;;  %v556_v24 = vpop.f32.mrb[2].mxu1 }
  0xea   :  { %v3463_v25 = vrot.slane %v379_v17, %v3455_v14  ;;  %v3466_v26 = vrot.slane %v580_v18, %v3455_v14  ;;  %v595_v27 = vcombine.high %v587_v19, %v587_v19  ;;  %v3097_v28 = vpop.f32.mrb[3].mxu0  ;;  %v3117_v29 = vpop.f32.mrb[3].mxu1  ;;  %v396_v30 = vcombine.high %v355_v23, %v355_v23 }
  0xeb   :  { %v3469_v31 = vrot.slane %v355_v23, %v3455_v14  ;;  %v597_v32 = vcombine.high %v556_v24, %v556_v24  ;;  %v394_v35 = vcombine.high %v3459_v22, %v3459_v22  ;;  %v3480_v37 = vrot.slane %v556_v24, %v3455_v14 }
  0xec   :  { %v596_v33 = vcombine.high %v3466_v26, %v3466_v26  ;;  %v665_v36 = vrot.slane %v595_v27, 7  ;;  %v395_v39 = vcombine.high %v3463_v25, %v3463_v25  ;;  %v2941_v40 = vrot.slane %v587_v19, 9 }
  0xed   :  { %v3483_v38 = vrot.slane %v597_v32, %v3455_v14  ;;  %v668_v41 = vrot.slane %v3466_v26, 7  ;;  %v3489_v42 = vrot.slane %v396_v30, %v3455_v14  ;;  %v411_v44 = vcombine.high %v3469_v31, %v3469_v31 }
  0xee   :  { %v3491_v43 = vrot.slane %v596_v33, 7  ;;  %v612_v45 = vcombine.high %v3480_v37, %v3480_v37  ;;  %v674_v50 = vrot.slane %v3480_v37, 7  ;;  %v667_v56 = vrot.slane %v665_v36, 2 }
  0xef   :  { %v613_v46 = vcombine.high %v3483_v38, %v3483_v38  ;;  %v360_v47 = vpop.f32.mrb[4].mxu0  ;;  %v561_v48 = vpop.f32.mrb[4].mxu1  ;;  %v680_v51 = vrot.slane %v3483_v38, 7  ;;  %v670_v62 = vrot.slane %v668_v41, 2  ;;  %v666_v4 = vsel %vm3502_vm8, %v2941_v40, %v665_v36 }
  0xf0   :  { %v413_v52 = vcombine.high %v360_v47, %v360_v47  ;;  %v3509_v53 = vrot.slane %v360_v47, %v3455_v14  ;;  %v3100_v54 = vpop.f32.mrb[5].mxu0  ;;  %v3120_v55 = vpop.f32.mrb[5].mxu1  ;;  %v3511_v57 = vrot.slane %v612_v45, 7  ;;  %v614_v59 = vcombine.high %v561_v48, %v561_v48 }
  0xf1   :  { %v3513_v58 = vrot.slane %v613_v46, 7  ;;  %v363_v60 = vpop.f32.mrb[6].mxu0  ;;  %v564_v61 = vpop.f32.mrb[6].mxu1  ;;  %v3519_v0 = vrot.slane %v561_v48, %v3455_v14  ;;  %v673_v5 = vrot.slane %v3491_v43, 2  ;;  %v412_v7 = vcombine.high %v3489_v42, %v3489_v42 }
  0xf2   :  { %v3516_v63 = vrot.slane %v413_v52, %v3455_v14  ;;  %v3101_v2 = vpop.f32.mrb[7].mxu0  ;;  %v3121_v3 = vpop.f32.mrb[7].mxu1  ;;  %v628_v8 = vrot.slane %v614_v59, %v3455_v14  ;;  %v430_v9 = vcombine.high %v363_v60, %v363_v60  ;;  %v676_v11 = vrot.slane %v674_v50, 2 }
  0xf3   :  { %v679_v12 = vrot.slane %v3511_v57, 2  ;;  %v682_v13 = vrot.slane %v680_v51, 2  ;;  %v428_v15 = vcombine.high %v3509_v53, %v3509_v53  ;;  %v685_v16 = vrot.slane %v3513_v58, 2 }
  0xf4   :  { %v629_v17 = vcombine.high %v3519_v0, %v3519_v0  ;;  %v630_v18 = vcombine.high %v628_v8, %v628_v8  ;;  %v631_v19 = vcombine.high %v564_v61, %v564_v61  ;;  %v429_v20 = vcombine.high %v3516_v63, %v3516_v63 }
  0xf5   :  { %v690_v21 = vrot.slane %v628_v8, 7  ;;  %v3540_v23 = vrot.slane %v363_v60, %v3455_v14  ;;  %v638_v24 = vrot.slane %v564_v61, %v3455_v14  ;;  %v686_v26 = vrot.slane %v3519_v0, 7 }
  0xf6   :  { %v693_v27 = vrot.slane %v630_v18, 7  ;;  %v3545_v28 = vrot.slane %v430_v9, %v3455_v14  ;;  %v645_v29 = vrot.slane %v631_v19, %v3455_v14  ;;  %v669_v45 = vsel %vm3502_vm8, %v667_v56, %v668_v41 }
  0xf7   :  { %v3548_v30 = vpop.f32.mrb[8].mxu0  ;;  %v569_v32 = vpop.f32.mrb[8].mxu1  ;;  %v646_v33 = vcombine.high %v638_v24, %v638_v24  ;;  %v696_v34 = vrot.slane %v638_v24, 7  ;;  %v2942_v47 = vrot.slane %v629_v17, 9  ;;  %v672_v54 = vsel %vm3502_vm8, %v670_v62, %v3491_v43 }
  0xf8   :  { %v3551_v36 = vrot.slane %v569_v32, %v3455_v14  ;;  %v3104_v40 = vpop.f32.mrb[9].mxu0  ;;  %v3124_v46 = vpop.f32.mrb[9].mxu1  ;;  %v647_v48 = vcombine.high %v645_v29, %v645_v29  ;;  %v702_v52 = vrot.slane %v645_v29, 7  ;;  %v692_v59 = vrot.slane %v690_v21, 2 }
  0xf9   :  { %v371_v53 = vpop.f32.mrb[10].mxu0  ;;  %v572_v55 = vpop.f32.mrb[10].mxu1  ;;  %v695_v60 = vrot.slane %v693_v27, 2  ;;  %v445_v61 = vcombine.high %v3540_v23, %v3540_v23  ;;  %v699_v0 = vrot.slane %v646_v33, 7  ;;  %v698_v8 = vrot.slane %v696_v34, 2 }
  0xfa   :  { %v3105_v2 = vpop.f32.mrb[11].mxu0  ;;  %v3125_v3 = vpop.f32.mrb[11].mxu1  ;;  %v705_v41 = vrot.slane %v647_v48, 7  ;;  %v729_v56 = vadd.f32 %v666_v4, %v3459_v22  ;;  %v730_v9 = vadd.f32 %v669_v45, %v394_v35  ;;  %v704_v18 = vrot.slane %v702_v52, 2 }
  0xfb   :  { %v701_v17 = vrot.slane %v699_v0, 2  ;;  %v708_v43 = vrot.slane %v3551_v36, 7  ;;  %v731_v62 = vadd.f32 %v672_v54, %v3463_v25  ;;  %v675_v24 = vsel %vm3502_vm8, %v673_v5, %v674_v50 }
  0xfc   :  { %v707_v19 = vrot.slane %v705_v41, 2  ;;  %v678_v4 = vsel %vm3502_vm8, %v676_v11, %v3511_v57  ;;  %v681_v22 = vsel %vm3502_vm8, %v679_v12, %v680_v51  ;;  %v684_v35 = vsel %vm3502_vm8, %v682_v13, %v3513_v58 }
  0xfd   :  { %v732_v37 = vadd.f32 %v675_v24, %v395_v39  ;;  %v733_v29 = vadd.f32 %v678_v4, %v3469_v31  ;;  %v734_v50 = vadd.f32 %v681_v22, %v411_v44  ;;  %v735_v38 = vadd.f32 %v684_v35, %v3489_v42 }
  0xfe   :  { %v687_v51 = vsel %vm3502_vm8, %v685_v16, %v686_v26  ;;  %v691_v5 = vsel %vm3502_vm8, %v2942_v47, %v690_v21  ;;  %v694_v58 = vsel %vm3502_vm8, %v692_v59, %v693_v27  ;;  %v697_v16 = vsel %vm3502_vm8, %v695_v60, %v696_v34 }
  0xff   :  { %v812_v57 = vpop.f32.mrb[12].mxu0  ;;  %v736_v31 = vadd.f32 %v687_v51, %v412_v7  ;;  %v737_v44 = vadd.f32 %v691_v5, %v428_v15  ;;  %v738_v13 = vadd.f32 %v694_v58, %v3516_v63  ;;  %v700_v21 = vsel %vm3502_vm8, %v698_v8, %v699_v0 }
 0x100   :  { %v839_v25 = vcombine.high %v812_v57, %v812_v57  ;;  %v846_v39 = vrot.slane %v812_v57, %v3455_v14  ;;  %v3136_v11 = vpop.f32.mrb[13].mxu0  ;;  %v703_v26 = vsel %vm3502_vm8, %v701_v17, %v702_v52  ;;  %v706_v15 = vsel %vm3502_vm8, %v704_v18, %v705_v41 }
 0x101   :  { %v815_v12 = vpop.f32.mrb[14].mxu0  ;;  %v739_v34 = vadd.f32 %v697_v16, %v429_v20  ;;  %v740_v40 = vadd.f32 %v700_v21, %v3540_v23  ;;  %v741_v45 = vadd.f32 %v703_v26, %v445_v61  ;;  %v742_v55 = vadd.f32 %v706_v15, %v3545_v28 }
 0x102   :  { %v853_v27 = vrot.slane %v839_v25, %v3455_v14  ;;  %v854_v32 = vcombine.high %v846_v39, %v846_v39  ;;  %v856_v33 = vcombine.high %v815_v12, %v815_v12  ;;  %v863_v42 = vrot.slane %v815_v12, %v3455_v14  ;;  %v3137_v7 = vpop.f32.mrb[15].mxu0 }
 0x103   :  { %v709_v59 = vsel %vm3502_vm8, %v707_v19, %v708_v43  ;;  %v655_v0 = vcombine.high %v3551_v36, %v3551_v36  ;;  %v446_v17 = vcombine.high %v3545_v28, %v3545_v28  ;;  %v453_v18 = vrot.slane %v3548_v30, %v3455_v14 }
 0x104   :  { %v855_v46 = vcombine.high %v853_v27, %v853_v27  ;;  %v3613_v47 = vadd.f32 %v854_v32, %v729_v56  ;;  %v3615_v48 = vadd.f32 %v853_v27, %v730_v9  ;;  %v870_v52 = vrot.slane %v856_v33, %v3455_v14 }
 0x105   :  { %v871_v53 = vcombine.high %v863_v42, %v863_v42  ;;  %v3618_v54 = vadd.f32 %v863_v42, %v732_v37  ;;  %v711_v24 = vrot.slane %v655_v0, 7 }
 0x106   :  { %v3623_v63 = vadd.f32 %v855_v46, %v731_v62  ;;  %v872_v20 = vcombine.high %v870_v52, %v870_v52  ;;  %v3627_v60 = vadd.f32 %v870_v52, %v734_v50  ;;  %v962_v41 = vcombine.low %v3613_v47, %v3615_v48 }
 0x107   :  { %v3625_v23 = vadd.f32 %v871_v53, %v733_v29  ;;  %v820_v61 = vpop.f32.mrb[16].mxu0  ;;  %v710_v62 = vrot.slane %v708_v43, 2  ;;  %v3642_v36 = vmul.f32 %v3613_v47, %v3613_v47  ;;  %v1056_v35 = vmul.f32 %v3615_v48, %v3615_v48 }
 0x108   :  { %v3140_v2 = vpop.f32.mrb[17].mxu0  ;;  %v3631_v3 = vadd.f32 %v872_v20, %v735_v38  ;;  %v873_v56 = vcombine.high %v820_v61, %v820_v61  ;;  %v880_v19 = vrot.slane %v820_v61, %v3455_v14  ;;  %v1058_v28 = vmul.f32 %v3618_v54, %v3618_v54 }
 0x109   :  { %v823_v8 = vpop.f32.mrb[18].mxu0  ;;  %v3653_v43 = vrot.slane %v962_v41, %v3455_v14  ;;  %v1057_v38 = vmul.f32 %v3623_v63, %v3623_v63  ;;  %v1059_v39 = vmul.f32 %v3625_v23, %v3625_v23  ;;  %v1060_v16 = vmul.f32 %v3627_v60, %v3627_v60 }
 0x10a   :  { %v3141_v9 = vpop.f32.mrb[19].mxu0  ;;  %v887_v4 = vrot.slane %v873_v56, %v3455_v14  ;;  %v889_v22 = vcombine.high %v823_v8, %v823_v8  ;;  %v3649_v37 = vadd.f32 %v880_v19, %v736_v31  ;;  %v896_v30 = vrot.slane %v823_v8, %v3455_v14 }
 0x10b   :  { %v1061_v26 = vmul.f32 %v3631_v3, %v3631_v3  ;;  %v1087_v33 = vcombine.low %v3642_v36, %v1056_v35  ;;  %v712_v46 = vsel %vm3502_vm8, %v710_v62, %v711_v24  ;;  %v1088_v61 = vcombine.low %v1057_v38, %v1058_v28 }
 0x10c   :  { %v888_v29 = vcombine.high %v887_v4, %v887_v4  ;;  %v3655_v50 = vadd.f32 %v887_v4, %v737_v44  ;;  %v903_v57 = vrot.slane %v889_v22, %v3455_v14  ;;  %v1062_v51 = vmul.f32 %v3649_v37, %v3649_v37 }
 0x10d   :  { %v904_v5 = vcombine.high %v896_v30, %v896_v30  ;;  %v3662_v58 = vadd.f32 %v896_v30, %v739_v34  ;;  %v980_v21 = vcombine.low %v3631_v3, %v3649_v37  ;;  %v979_v34 = vcombine.low %v3625_v23, %v3627_v60 }
 0x10e   :  { %v3666_v11 = vadd.f32 %v888_v29, %v738_v13  ;;  %v905_v31 = vcombine.high %v903_v57, %v903_v57  ;;  %v3668_v44 = vadd.f32 %v903_v57, %v741_v45  ;;  %v963_v13 = vcombine.low %v3623_v63, %v3618_v54 }
 0x10f   :  { %v828_v25 = vpop.f32.mrb[20].mxu0  ;;  %v3676_v27 = vadd.f32 %v904_v5, %v740_v40  ;;  %v1105_v45 = vcombine.low %v1061_v26, %v1062_v51  ;;  %v1063_v53 = vmul.f32 %v3655_v50, %v3655_v50  ;;  %v1065_v20 = vmul.f32 %v3662_v58, %v3662_v58 }
 0x110   :  { %v3144_v12 = vpop.f32.mrb[21].mxu0  ;;  %v1064_v42 = vmul.f32 %v3666_v11, %v3666_v11  ;;  %v3683_v7 = vadd.f32 %v905_v31, %v742_v55  ;;  %v996_v52 = vcombine.low %v3655_v50, %v3666_v11  ;;  %v1104_v0 = vcombine.low %v1059_v39, %v1060_v16 }
 0x111   :  { %v831_v32 = vpop.f32.mrb[22].mxu0  ;;  %v1066_v40 = vmul.f32 %v3676_v27, %v3676_v27  ;;  %v997_v55 = vcombine.low %v3662_v58, %v3676_v27  ;;  %v994_v2 = vrot.slane %v980_v21, %v3455_v14  ;;  %v743_v8 = vadd.f32 %v709_v59, %v446_v17 }
 0x112   :  { %v3145_v15 = vpop.f32.mrb[23].mxu0  ;;  %v1121_v41 = vcombine.low %v1063_v53, %v1064_v42  ;;  %v744_v9 = vadd.f32 %v712_v46, %v453_v18  ;;  %v912_v62 = vrot.slane %v828_v25, %v3455_v14  ;;  %v977_v19 = vrot.slane %v963_v13, %v3455_v14 }
 0x113   :  { %v1122_v56 = vcombine.low %v1065_v20, %v1066_v40  ;;  %v987_v24 = vrot.slane %v979_v34, %v3455_v14  ;;  %v1119_v36 = vrot.slane %v1105_v45, %v3455_v14  ;;  %v1068_v4 = vmul.f32 %v3683_v7, %v3683_v7 }
 0x114   :  { %v1004_v22 = vrot.slane %v996_v52, %v3455_v14  ;;  %v1011_v35 = vrot.slane %v997_v55, %v3455_v14  ;;  %v913_v28 = vcombine.high %v912_v62, %v912_v62  ;;  %v3708_v59 = vadd.f32 %v912_v62, %v743_v8 }
 0x115   :  { %v1102_v17 = vrot.slane %v1088_v61, %v3455_v14  ;;  %v1112_v18 = vrot.slane %v1104_v0, %v3455_v14  ;;  %v1013_v30 = vcombine.low %v3668_v44, %v3683_v7  ;;  %v1067_v29 = vmul.f32 %v3668_v44, %v3668_v44 }
 0x116   :  { %v995_v57 = vcombine.low %v987_v24, %v994_v2  ;;  %v1129_v38 = vrot.slane %v1121_v41, %v3455_v14  ;;  %v1136_v51 = vrot.slane %v1122_v56, %v3455_v14  ;;  %v3718_v5 = vadd.f32 %v913_v28, %v744_v9 }
 0x117   :  { %v1095_v25 = vrot.slane %v1087_v33, %v3455_v14  ;;  %v978_v39 = vcombine.low %v3653_v43, %v977_v19  ;;  %v1120_v31 = vcombine.low %v1112_v18, %v1119_v36  ;;  %v1138_v12 = vcombine.low %v1067_v29, %v1068_v4 }
 0x118   :  { %v1014_v16 = vcombine.low %v3708_v59, %v3718_v5  ;;  %v1069_v21 = vmul.f32 %v3708_v59, %v3708_v59  ;;  %v1070_v26 = vmul.f32 %v3718_v5, %v3718_v5  ;;  %v1012_v32 = vcombine.low %v1004_v22, %v1011_v35 }
 0x119   :  { %v1103_v13 = vcombine.low %v1095_v25, %v1102_v17  ;;  %v1021_v42 = vrot.slane %v1013_v30, %v3455_v14  ;;  %v1034_v34 = vadd.f32 %v995_v57, %v978_v39  ;;  %v1137_v43 = vcombine.low %v1129_v38, %v1136_v51  ;;  %v1296_v25 = vld [vmem:[#allocation2] sm:$0x1] }
 0x11a   :  { %v1028_v15 = vrot.slane %v1014_v16, %v3455_v14  ;;  %v1139_v33 = vcombine.low %v1069_v21, %v1070_v26  ;;  %v1146_v45 = vrot.slane %v1138_v12, %v3455_v14  ;;  %v1299_v12 = vld [vmem:[#allocation2 + $0xc] sm:$0x1]  ;;  %v1304_v21 = vld [vmem:[#allocation2 + $0x8] sm:$0x1] }
 0x11b   :  { %v1035_v52 = vadd.f32 %v1034_v34, %v1012_v32  ;;  %v1159_v53 = vadd.f32 %v1120_v31, %v1103_v13  ;;  %v1297_v31 = vsel %vm3740_vm10, 0, %v1296_v25  ;;  %v1300_v26 = vsel %vm3740_vm10, 0, %v1299_v12  ;;  %v3250_v34 = vld [vmem:[%s4276_s2] sm:$0xff]  }
 0x11c   :  { %v1153_v40 = vrot.slane %v1139_v33, %v3455_v14  ;;  %v1029_v46 = vcombine.low %v1021_v42, %v1028_v15  ;;  %1298 = vst [vmem:[#allocation2] sm:$0x1] %v1297_v31  ;;  %v1305_v32 = vsel %vm3748_vm12, 0, %v1304_v21  ;;  %1301 = vst [vmem:[#allocation2 + $0xc] sm:$0x1] %v1300_v26  ;;  %3147 = vmatpush3.bf16.msra.mxu1 %v3250_v34 }
 0x11d   :  { %v1160_v61 = vadd.f32 %v1159_v53, %v1137_v43  ;;  %1306 = vst [vmem:[#allocation2 + $0x8] sm:$0x1] %v1305_v32  ;;  %v3251_v43 = vld [vmem:[%s4276_s2 + $0x40] sm:$0xff]   ;;  %3148 = vmatprep.subr.bf16.mxu1 %v3278_v1  ;;  %v3256_v53 = vld [vmem:[%s4276_s2 + $0x18] sm:$0xff]  }
 0x11e   :  { %v1036_v55 = vadd.f32 %v1035_v52, %v1029_v46  ;;  %v1154_v20 = vcombine.low %v1146_v45, %v1153_v40  ;;  %v3252_v45 = vld [vmem:[%s4276_s2 + $0x8] sm:$0xff]   ;;  %3175 = vmatpush3.bf16.msra.mxu0 %v3251_v43  ;;  %v3254_v46 = vld [vmem:[%s4276_s2 + $0x10] sm:$0xff]   ;;  %v1190_v31 = vld [vmem:[%s4278_s4] sm:$0x1] }
 0x11f   :  { %v3253_v40 = vld [vmem:[%s4276_s2 + $0x48] sm:$0xff]   ;;  %3176 = vmatprep.subr.bf16.mxu0 %v3278_v1  ;;  %v3255_v52 = vld [vmem:[%s4276_s2 + $0x50] sm:$0xff]  }
 0x120   :  { %v1037_v0 = vrot.slane %v1036_v55, 4  ;;  %v1161_v2 = vadd.f32 %v1160_v61, %v1154_v20  ;;  %3149 = vmatpush3.bf16.msra.mxu1 %v3252_v45  ;;  %v3258_v20 = vld [vmem:[%s4276_s2 + $0x20] sm:$0xff]  }
 0x121   :  { %3150 = vmatprep.subr.bf16.mxu1 %v3278_v1  ;;  %v3259_v61 = vld [vmem:[%s4276_s2 + $0x60] sm:$0xff]  }
 0x122   :  { %v1038_v8 = vadd.f32 %v1037_v0, %v1036_v55  ;;  %v1162_v41 = vrot.slane %v1161_v2, 4  ;;  %3177 = vmatpush3.bf16.msra.mxu0 %v3253_v40  ;;  %v3257_v55 = vld [vmem:[%s4276_s2 + $0x58] sm:$0xff]   ;;  %v3260_v0 = vld [vmem:[%s4276_s2 + $0x28] sm:$0xff]  }
 0x123   :  { %3178 = vmatprep.subr.bf16.mxu0 %v3278_v1 }
 0x124   :  { %v1039_v56 = vrot.slane %v1038_v8, 2  ;;  %v1163_v9 = vadd.f32 %v1162_v41, %v1161_v2  ;;  %3151 = vmatpush3.bf16.msra.mxu1 %v3254_v46  ;;  %v1307_v2 = vld [vmem:[#allocation2 + $0x14] sm:$0x1] }
 0x125   :  { %3152 = vmatprep.subr.bf16.mxu1 %v3278_v1  ;;  %v1308_v41 = vsel %vm3748_vm12, 0, %v1307_v2 }
 0x126   :  { %v1040_v62 = vadd.f32 %v1039_v56, %v1038_v8  ;;  %v1164_v19 = vrot.slane %v1163_v9, 2  ;;  %3179 = vmatpush3.bf16.msra.mxu0 %v3255_v52  ;;  %v3261_v8 = vld [vmem:[%s4276_s2 + $0x68] sm:$0xff]   ;;  %1309 = vst [vmem:[#allocation2 + $0x14] sm:$0x1] %v1308_v41  ;;  %v3262_v56 = vld [vmem:[%s4276_s2 + $0x30] sm:$0xff]  }
 0x127   :  { %3180 = vmatprep.subr.bf16.mxu0 %v3278_v1 }
 0x128   :  { %v1041_v24 = vrot.slane %v1040_v62, 1  ;;  %v1165_v36 = vadd.f32 %v1164_v19, %v1163_v9  ;;  %3153 = vmatpush3.bf16.msra.mxu1 %v3256_v53  ;;  %v3263_v9 = vld [vmem:[%s4276_s2 + $0x70] sm:$0xff]   ;;  %v3265_v19 = vld [vmem:[%s4276_s2 + $0x78] sm:$0xff]  }
 0x129   :  { %3154 = vmatprep.subr.bf16.mxu1 %v3278_v1 }
 0x12a   :  { %v1042_v4 = vadd.f32 %v1041_v24, %v1040_v62  ;;  %v1166_v22 = vrot.slane %v1165_v36, 1  ;;  %3181 = vmatpush3.bf16.msra.mxu0 %v3257_v55  ;;  %v3264_v62 = vld [vmem:[%s4276_s2 + $0x38] sm:$0xff]  }
 0x12b   :  { %3182 = vmatprep.subr.bf16.mxu0 %v3278_v1 }
 0x12c   :  { %1043 = vrot.lane.b32.xlu0 %v1042_v4, %s3282_s1  ;;  %v1167_v35 = vadd.f32 %v1166_v22, %v1165_v36  ;;  %3155 = vmatpush3.bf16.msra.mxu1 %v3258_v20 }
 0x12d   :  { %3156 = vmatprep.subr.bf16.mxu1 %v3278_v1 }
 0x12e   :  { %3183 = vmatpush3.bf16.msra.mxu0 %v3259_v61 }
 0x12f   :  { %3184 = vmatprep.subr.bf16.mxu0 %v3278_v1 }
 0x130   :  { %1168 = vrot.lane.b32.xlu0 %v1167_v35, %s3282_s1  ;;  %3157 = vmatpush3.bf16.msra.mxu1 %v3260_v0 }
 0x131   :  { %3158 = vmatprep.subr.bf16.mxu1 %v3278_v1 }
 0x132   :  { %3185 = vmatpush3.bf16.msra.mxu0 %v3261_v8 }
 0x133   :  { %3186 = vmatprep.subr.bf16.mxu0 %v3278_v1 }
 0x134   :  { %3159 = vmatpush3.bf16.msra.mxu1 %v3262_v56 }
 0x135   :  { %3160 = vmatprep.subr.bf16.mxu1 %v3278_v1 }
 0x136   :  { %3187 = vmatpush3.bf16.msra.mxu0 %v3263_v9 }
 0x137   :  { %3188 = vmatprep.subr.bf16.mxu0 %v3278_v1 }
 0x138   :  { %3161 = vmatpush3.bf16.msra.mxu1 %v3264_v62 }
 0x139   :  { %3202 = vmatprep.subr.bf16.mxu1 %v3278_v1 }
 0x13a   :  { %3189 = vmatpush3.bf16.msra.mxu0 %v3265_v19 }
 0x19e   :  { %v1044_v28 = vpop.permute.xlu0 %1043 }
 0x19f   :  { %v1045_v17 = vadd.f32 %v1044_v28, %v1042_v4 }
 0x1a1   :  { %1046 = vrot.lane.b32.xlu1 %v1045_v17, %s3283_s13 }
 0x1a2   :  { %v1169_v18 = vpop.permute.xlu0 %1168 }
 0x1a3   :  { %v1170_v30 = vadd.f32 %v1169_v18, %v1167_v35 }
 0x1a5   :  { %1171 = vrot.lane.b32.xlu1 %v1170_v30, %s3283_s13 }
 0x213   :  { %v1047_v29 = vpop.permute.xlu1 %1046 }
 0x214   :  { %v1048_v57 = vadd.f32 %v1047_v29, %v1045_v17 }
 0x216   :  { %1049 = vrot.lane.b32.xlu0 %v1048_v57, %s3284_s14 }
 0x217   :  { %v1172_v38 = vpop.permute.xlu1 %1171 }
 0x218   :  { %v1173_v51 = vadd.f32 %v1172_v38, %v1170_v30  ;;  %v3827_v38 = vsub.s32 0, %v3338_v6 }
 0x21a   :  { %1174 = vrot.lane.b32.xlu1 %v1173_v51, %s3284_s14 }
 0x288   :  { %v1050_v13 = vpop.permute.xlu0 %1049 }
 0x289   :  { %v1051_v42 = vadd.f32 %v1050_v13, %v1048_v57  ;;  %v1186_v57 = vld [vmem:[%s4277_s3] sm:$0x1] }
 0x28b   :  { %1052 = vrot.lane.b32.xlu0 %v1051_v42, %s3285_s15 }
 0x28c   :  { %v1175_v15 = vpop.permute.xlu1 %1174 }
 0x28d   :  { %v1176_v33 = vadd.f32 %v1175_v15, %v1173_v51 }
 0x28f   :  { %1177 = vrot.lane.b32.xlu1 %v1176_v33, %s3285_s15 }
 0x2fd   :  { %v1053_v24 = vpop.permute.xlu0 %1052 }
 0x2fe   :  { %v1054_v36 = vadd.f32 %v1053_v24, %v1051_v42 }
 0x300   :  { %v1181_v4 = vmul.f32 0.001953125, %v1054_v36 }
 0x301   :  { %v1178_v22 = vpop.permute.xlu1 %1177 }
 0x302   :  { %v1179_v35 = vadd.f32 %v1178_v22, %v1176_v33  ;;  %v1183_v28 = vmul.f32 %v1181_v4, %v1181_v4 }
 0x304   :  { %v1182_v17 = vmul.f32 0.001953125, %v1179_v35 }
 0x306   :  { %v1184_v18 = vsub.f32 %v1182_v17, %v1183_v28 }
 0x308   :  { %v1185_v30 = vmax.f32 %v1184_v18, 0.0 }
 0x30a   :  { %v1187_v29 = vadd.f32 1e-05, %v1185_v30 }
 0x30c   :  { %3274 = vrsqrt.f32 %v1187_v29 }
 0x316   :  { %v3275_v51 = vpop.eup %3274 }
 0x317   :  { %v1189_v25 = vmul.f32 %v3275_v51, %v1186_v57 }
 0x319   :  { %v1191_v12 = vmul.f32 %v1189_v25, %v1181_v4  ;;  %v1197_v16 = vrot.slane %v1189_v25, %v3827_v38 }
 0x31b   :  { %v1192_v21 = vsub.f32 %v1190_v31, %v1191_v12  ;;  %v1198_v26 = vcombine.high %v1197_v16, %v1197_v16  ;;  %v1205_v32 = vrot.slane %v1197_v16, %v3455_v14 }
 0x31d   :  { %v1212_v13 = vrot.slane %v1198_v26, %v3455_v14  ;;  %v1213_v42 = vcombine.high %v1205_v32, %v1205_v32  ;;  %v1239_v15 = vrot.slane %v1192_v21, %v3827_v38  ;;  %v1219_v33 = vmul.f32 %v1205_v32, %v3613_v47 }
 0x31e   :  { %v1223_v34 = vmul.f32 %v1205_v32, %v3625_v23  ;;  %v1227_v43 = vmul.f32 %v1205_v32, %v3655_v50  ;;  %v1231_v45 = vmul.f32 %v1205_v32, %v3668_v44 }
 0x31f   :  { %v1214_v6 = vcombine.high %v1212_v13, %v1212_v13  ;;  %v1220_v40 = vmul.f32 %v1213_v42, %v3615_v48  ;;  %v1221_v46 = vmul.f32 %v1212_v13, %v3623_v63  ;;  %v1224_v52 = vmul.f32 %v1213_v42, %v3627_v60 }
 0x320   :  { %v1225_v53 = vmul.f32 %v1212_v13, %v3631_v3  ;;  %v1228_v55 = vmul.f32 %v1213_v42, %v3666_v11  ;;  %v1229_v20 = vmul.f32 %v1212_v13, %v3662_v58  ;;  %v1240_v61 = vcombine.high %v1239_v15, %v1239_v15 }
 0x321   :  { %v1247_v47 = vrot.slane %v1239_v15, %v3455_v14  ;;  %v1222_v23 = vmul.f32 %v1214_v6, %v3618_v54  ;;  %v1226_v50 = vmul.f32 %v1214_v6, %v3649_v37  ;;  %v1230_v44 = vmul.f32 %v1214_v6, %v3676_v27 }
 0x322   :  { %v1232_v48 = vmul.f32 %v1213_v42, %v3683_v7  ;;  %v1233_v63 = vmul.f32 %v1212_v13, %v3708_v59  ;;  %v1234_v60 = vmul.f32 %v1214_v6, %v3718_v5  ;;  %v1254_v3 = vrot.slane %v1240_v61, %v3455_v14 }
 0x323   :  { %v1255_v11 = vcombine.high %v1247_v47, %v1247_v47  ;;  %v1261_v0 = vadd.f32 %v1247_v47, %v1219_v33  ;;  %v1265_v58 = vadd.f32 %v1247_v47, %v1223_v34  ;;  %v1269_v2 = vadd.f32 %v1247_v47, %v1227_v43 }
 0x324   :  { %v1273_v8 = vadd.f32 %v1247_v47, %v1231_v45  ;;  %v1256_v41 = vcombine.high %v1254_v3, %v1254_v3  ;;  %v1263_v54 = vadd.f32 %v1254_v3, %v1221_v46  ;;  %v1267_v37 = vadd.f32 %v1254_v3, %v1225_v53 }
 0x325   :  { %v1262_v56 = vadd.f32 %v1255_v11, %v1220_v40  ;;  %v1266_v9 = vadd.f32 %v1255_v11, %v1224_v52  ;;  %v1270_v62 = vadd.f32 %v1255_v11, %v1228_v55  ;;  %v1271_v27 = vadd.f32 %v1254_v3, %v1229_v20 }
 0x326   :  { %v1274_v19 = vadd.f32 %v1255_v11, %v1232_v48  ;;  %v1264_v7 = vadd.f32 %v1256_v41, %v1222_v23  ;;  %v1268_v24 = vadd.f32 %v1256_v41, %v1226_v50  ;;  %v1272_v59 = vadd.f32 %v1256_v41, %v1230_v44 }
 0x327   :  { %v1275_v36 = vadd.f32 %v1254_v3, %v1233_v63  ;;  %v1276_v5 = vadd.f32 %v1256_v41, %v1234_v60  ;;  %v1277_v4 = vmax.f32 %v1261_v0, 0.0  ;;  %v1278_v22 = vmax.f32 %v1262_v56, 0.0 }
 0x328   :  { %v1279_v35 = vmax.f32 %v1263_v54, 0.0  ;;  %v1280_v28 = vmax.f32 %v1264_v7, 0.0  ;;  %v1281_v17 = vmax.f32 %v1265_v58, 0.0  ;;  %v1282_v18 = vmax.f32 %v1266_v9, 0.0  ;;  %v1458_v9 = vld [vmem:[#allocation2 + $0x8] sm:$0x1] }
 0x329   :  { %v1283_v30 = vmax.f32 %v1267_v37, 0.0  ;;  %v1284_v29 = vmax.f32 %v1268_v24, 0.0  ;;  %v1285_v57 = vmax.f32 %v1269_v2, 0.0  ;;  %v1286_v51 = vmax.f32 %v1270_v62, 0.0  ;;  %v1454_v2 = vld [vmem:[#allocation2] sm:$0xf] }
 0x32a   :  { %v1287_v25 = vmax.f32 %v1271_v27, 0.0  ;;  %v1288_v31 = vmax.f32 %v1272_v59, 0.0  ;;  %v1289_v12 = vmax.f32 %v1273_v8, 0.0  ;;  %v1290_v16 = vmax.f32 %v1274_v19, 0.0  ;;  %v1461_v24 = vld [vmem:[#allocation2 + $0xc] sm:$0xf] }
 0x32b   :  { %v1291_v21 = vmax.f32 %v1275_v36, 0.0  ;;  %v1292_v26 = vmax.f32 %v1276_v5, 0.0  ;;  %v1326_v32 = vcombine.low %v1277_v4, %v1278_v22  ;;  %v1327_v13 = vcombine.low %v1279_v35, %v1280_v28  ;;  %v3266_v7 = vld [vmem:[%s4276_s2 + $0x80] sm:$0xff]  }
 0x32c   :  { %v1343_v42 = vcombine.low %v1281_v17, %v1282_v18  ;;  %v1344_v15 = vcombine.low %v1283_v30, %v1284_v29  ;;  %v1360_v6 = vcombine.low %v1285_v57, %v1286_v51  ;;  %v1361_v33 = vcombine.low %v1287_v25, %v1288_v31  ;;  %v1465_v18 = vld [vmem:[#allocation2 + $0x14] sm:$0x1] }
 0x32d   :  { %v1377_v34 = vcombine.low %v1289_v12, %v1290_v16  ;;  %v1334_v43 = vrot.slane %v1326_v32, %v3455_v14  ;;  %v1341_v45 = vrot.slane %v1327_v13, %v3455_v14  ;;  %v1378_v40 = vcombine.low %v1291_v21, %v1292_v26 }
 0x32e   :  { %v1351_v46 = vrot.slane %v1343_v42, %v3455_v14  ;;  %v1358_v52 = vrot.slane %v1344_v15, %v3455_v14  ;;  %v1368_v53 = vrot.slane %v1360_v6, %v3455_v14  ;;  %v1375_v55 = vrot.slane %v1361_v33, %v3455_v14 }
 0x32f   :  { %v1342_v20 = vcombine.low %v1334_v43, %v1341_v45  ;;  %v1385_v61 = vrot.slane %v1377_v34, %v3455_v14  ;;  %v1392_v47 = vrot.slane %v1378_v40, %v3455_v14 }
 0x330   :  { %v1359_v23 = vcombine.low %v1351_v46, %v1358_v52  ;;  %v1376_v50 = vcombine.low %v1368_v53, %v1375_v55 }
 0x331   :  { %v1393_v44 = vcombine.low %v1385_v61, %v1392_v47  ;;  %v3028_v48 = vpack.c.bf16 %v1342_v20, %v1342_v20 }
 0x332   :  { %v3029_v63 = vpack.c.bf16 %v1359_v23, %v1359_v23  ;;  %v3030_v60 = vpack.c.bf16 %v1376_v50, %v1376_v50 }
 0x333   :  { %v3031_v3 = vpack.c.bf16 %v1393_v44, %v1393_v44  ;;  %v1413_v11 = vshrl.u32 %v3028_v48, 16  ;;  %v1416_v41 = vshll.u32 %v3028_v48, 16 }
 0x334   :  { %v1421_v0 = vshrl.u32 %v3029_v63, 16  ;;  %v1430_v58 = vshrl.u32 %v3030_v60, 16  ;;  %v1424_v62 = vshll.u32 %v3029_v63, 16  ;;  %v1433_v19 = vshll.u32 %v3030_v60, 16 }
 0x335   :  { %v1415_v8 = vrot.slane %v1413_v11, 7  ;;  %v1438_v56 = vshrl.u32 %v3031_v3, 16  ;;  %v1441_v4 = vshll.u32 %v3031_v3, 16 }
 0x336   :  { %v1423_v37 = vrot.slane %v1421_v0, 7  ;;  %v1432_v27 = vrot.slane %v1430_v58, 7 }
 0x337   :  { %v1418_v59 = vor.u32 %v1416_v41, %v1415_v8  ;;  %v1419_v36 = vrot.slane %v1415_v8, 4  ;;  %v1440_v5 = vrot.slane %v1438_v56, 7 }
 0x338   :  { %v1426_v22 = vor.u32 %v1424_v62, %v1423_v37  ;;  %v1428_v35 = vrot.slane %v1423_v37, 4  ;;  %v1435_v28 = vor.u32 %v1433_v19, %v1432_v27  ;;  %v1436_v17 = vrot.slane %v1432_v27, 4 }
 0x339   :  { %v1443_v30 = vor.u32 %v1441_v4, %v1440_v5  ;;  %v1445_v29 = vrot.slane %v1440_v5, 4  ;;  %v1455_v57 = vsel %vm3863_vm15, %v1418_v59, %v1454_v2  ;;  %v3267_v4 = vld [vmem:[%s4276_s2 + $0x88] sm:$0xff]  }
 0x33a   :  { %v1427_v51 = vsel %vm3868_vm1, %v1419_v36, %v1426_v22  ;;  %1456 = vst [vmem:[#allocation2] sm:$0xf] %v1455_v57  ;;  %v1459_v25 = vsel %vm3740_vm10, %v1428_v35, %v1458_v9  ;;  %v1462_v31 = vsel %vm3863_vm15, %v1435_v28, %v1461_v24 }
 0x33b   :  { %1457 = vst [vmem:[#allocation2 + $0x4] sm:$0xf] %v1427_v51  ;;  %1460 = vst [vmem:[#allocation2 + $0x8] sm:$0x1] %v1459_v25  ;;  %v1444_v12 = vsel %vm3868_vm1, %v1436_v17, %v1443_v30  ;;  %v1466_v16 = vsel %vm3740_vm10, %v1445_v29, %v1465_v18  ;;  %v3268_v30 = vld [vmem:[%s4276_s2 + $0x90] sm:$0xff]   ;;  %v3269_v51 = vld [vmem:[%s4276_s2 + $0x98] sm:$0xff]  }
 0x33c   :  { %1463 = vst [vmem:[#allocation2 + $0xc] sm:$0xf] %v1462_v31  ;;  %1464 = vst [vmem:[#allocation2 + $0x10] sm:$0xf] %v1444_v12  ;;  %v3270_v31 = vld [vmem:[%s4276_s2 + $0xa0] sm:$0xff]  }
 0x33d   :  { %1467 = vst [vmem:[#allocation2 + $0x14] sm:$0x1] %v1466_v16  ;;  %v3271_v16 = vld [vmem:[%s4276_s2 + $0xa8] sm:$0xff]  }
 0x341   :  { %v2962_v21 = vld.sshfl [vmem:[#allocation2] sm:$0x33 pattern:$0x75316420] }
 0x342   :  { %v2963_v26 = vld.sshfl [vmem:[#allocation2 + $0x4] sm:$0x33 pattern:$0x75316420]  ;;  %v1487_v32 = vcombine.high %v2962_v21, %v2962_v21  ;;  %v1494_v15 = vrot.slane %v2962_v21, %v3349_v10  ;;  %v3272_v21 = vld [vmem:[%s4276_s2 + $0xb0] sm:$0xff]  }
 0x343   :  { %v1511_v13 = vcombine.high %v2963_v26, %v2963_v26  ;;  %v2964_v42 = vld.sshfl [vmem:[#allocation2 + $0x8] sm:$0x1 pattern:$0x75316420]  ;;  %v1518_v33 = vrot.slane %v2963_v26, %v3349_v10 }
 0x344   :  { %v1501_v6 = vrot.slane %v1487_v32, %v3349_v10  ;;  %v2965_v34 = vld.sshfl [vmem:[#allocation2 + $0xc] sm:$0x33 pattern:$0x75316420]  ;;  %v1541_v39 = vrot.slane %v2964_v42, %v3349_v10 }
 0x345   :  { %v1525_v43 = vrot.slane %v1511_v13, %v3349_v10  ;;  %v2966_v45 = vld.sshfl [vmem:[#allocation2 + $0x10] sm:$0x33 pattern:$0x75316420]  ;;  %v1549_v40 = vcombine.high %v2965_v34, %v2965_v34  ;;  %v1556_v46 = vrot.slane %v2965_v34, %v3349_v10 }
 0x346   :  { %v1620_v52 = vcombine.low %v1494_v15, %v1501_v6  ;;  %v2968_v53 = vcombine.high %v1494_v15, %v1501_v6  ;;  %v1573_v55 = vcombine.high %v2966_v45, %v2966_v45  ;;  %v1580_v20 = vrot.slane %v2966_v45, %v3349_v10  ;;  %v2967_v22 = vld.sshfl [vmem:[#allocation2 + $0x14] sm:$0x1 pattern:$0x75316420] }
 0x347   :  { %v1622_v61 = vcombine.low %v1518_v33, %v1525_v43  ;;  %v2969_v47 = vcombine.high %v1518_v33, %v1525_v43  ;;  %v1563_v23 = vrot.slane %v1549_v40, %v3349_v10  ;;  %v1564_v50 = vcombine.high %v1556_v46, %v1556_v46 }
 0x348   :  { %v1630_v44 = vrot.slane %v1620_v52, %v3349_v10  ;;  %v1637_v48 = vrot.slane %v2968_v53, %v3349_v10  ;;  %v1587_v63 = vrot.slane %v1573_v55, %v3349_v10  ;;  %v1588_v60 = vcombine.high %v1580_v20, %v1580_v20 }
 0x349   :  { %v1644_v3 = vrot.slane %v1622_v61, %v3349_v10  ;;  %v1651_v11 = vrot.slane %v2969_v47, %v3349_v10  ;;  %v1565_v0 = vcombine.high %v1563_v23, %v1563_v23  ;;  %v1670_v2 = vcombine.low %v1563_v23, %v1564_v50 }
 0x34a   :  { %v1652_v58 = vcombine.low %v1630_v44, %v1637_v48  ;;  %v1672_v8 = vcombine.low %v1587_v63, %v1588_v60  ;;  %v1669_v56 = vcombine.low %v1541_v39, %v1556_v46  ;;  %v1589_v28 = vcombine.high %v1587_v63, %v1587_v63 }
 0x34b   :  { %v1653_v41 = vcombine.low %v1644_v3, %v1651_v11  ;;  %v1671_v54 = vcombine.low %v1565_v0, %v1580_v20  ;;  %v1686_v62 = vrot.slane %v1670_v2, %v3349_v10  ;;  %v1603_v18 = vrot.slane %v2967_v22, %v3349_v10 }
 0x34c   :  { %v1660_v9 = vrot.slane %v1652_v58, %v3349_v10  ;;  %v1700_v19 = vrot.slane %v1672_v8, %v3349_v10  ;;  %v1679_v59 = vrot.slane %v1669_v56, %v3349_v10 }
 0x34d   :  { %v1667_v37 = vrot.slane %v1653_v41, %v3349_v10  ;;  %v1693_v27 = vrot.slane %v1671_v54, %v3349_v10  ;;  %v1718_v57 = vcombine.low %v1589_v28, %v1603_v18 }
 0x34e   :  { %v1701_v5 = vcombine.low %v1679_v59, %v1686_v62 }
 0x34f   :  { %v1668_v24 = vcombine.low %v1660_v9, %v1667_v37  ;;  %v1702_v36 = vcombine.low %v1693_v27, %v1700_v19  ;;  %v1725_v25 = vrot.slane %v1718_v57, %v3349_v10 }
 0x350   :  { %v1709_v17 = vrot.slane %v1701_v5, %v3349_v10 }
 0x351   :  { %3163 = vmatmul.mubr.bf16.vlgmr.msra.gmra.mrb[12].mxu1 %v1668_v24  ;;  %3191 = vmatmul.mubr.bf16.vlgmr.msra.gmra.mrb[24].mxu0 %v1668_v24  ;;  %v1716_v35 = vrot.slane %v1702_v36, %v3349_v10  ;;  %v1732_v12 = vrot.slane %v1725_v25, %v3349_v10  ;;  %v3273_v10 = vld [vmem:[%s4276_s2 + $0xb8] sm:$0xff]  }
 0x352   :  { %3203 = vmatpush3.bf16.msra.mxu1 %v3266_v7  ;;  %3166 = vmatprep.mubr.msk.bf16.mxu1 %vm3280_vm0, %v3278_v1 }
 0x353   :  { %3204 = vmatprep.subr.bf16.mxu1 %v3278_v1  ;;  %3194 = vmatprep.mubr.msk.bf16.mxu0 %vm3280_vm0, %v3278_v1  ;;  %v1717_v29 = vcombine.low %v1709_v17, %v1716_v35 }
 0x356   :  { %3205 = vmatpush3.bf16.msra.mxu1 %v3267_v4 }
 0x357   :  { %3206 = vmatprep.subr.bf16.mxu1 %v3278_v1 }
 0x359   :  { %3167 = vmatmul.mubr.bf16.gmra.mrb[16].mxu1 %v1717_v29  ;;  %3195 = vmatmul.mubr.bf16.gmra.mrb[28].mxu0 %v1717_v29 }
 0x35a   :  { %3207 = vmatpush3.bf16.msra.mxu1 %v3268_v30  ;;  %3170 = vmatprep.mubr.msk.bf16.mxu1 %vm3280_vm0, %v3278_v1 }
 0x35b   :  { %3208 = vmatprep.subr.bf16.mxu1 %v3278_v1  ;;  %3198 = vmatprep.mubr.msk.bf16.mxu0 %vm3280_vm0, %v3278_v1 }
 0x35e   :  { %3209 = vmatpush3.bf16.msra.mxu1 %v3269_v51 }
 0x35f   :  { %3210 = vmatprep.subr.bf16.mxu1 %v3278_v1 }
 0x361   :  { %3171 = vmatmul.mubr.bf16.gmra.mrb[20].mxu1 %v1732_v12  ;;  %3199 = vmatmul.mubr.bf16.gmra.mrb[32].mxu0 %v1732_v12 }
 0x362   :  { %3211 = vmatpush3.bf16.msra.mxu1 %v3270_v31  ;;  %3218 = vmatprep.mubr.msk.bf16.mxu1 %vm3280_vm0, %v3278_v1 }
 0x363   :  { %3212 = vmatprep.subr.bf16.mxu1 %v3278_v1 }
 0x366   :  { %3213 = vmatpush3.bf16.msra.mxu1 %v3271_v16 }
 0x367   :  { %3214 = vmatprep.subr.bf16.mxu1 %v3278_v1 }
 0x36a   :  { %3215 = vmatpush3.bf16.msra.mxu1 %v3272_v21 }
 0x36b   :  { %3216 = vmatprep.subr.bf16.mxu1 %v3278_v1 }
 0x36e   :  { %3217 = vmatpush3.bf16.msra.mxu1 %v3273_v10 }
 0x371   :  { %3219 = vmatmul.mubr.bf16.vlgmr.msra.gmra.mrb[24].mxu1 %v1668_v24 }
 0x372   :  { %3222 = vmatprep.mubr.msk.bf16.mxu1 %vm3280_vm0, %v3278_v1 }
 0x379   :  { %3223 = vmatmul.mubr.bf16.gmra.mrb[28].mxu1 %v1717_v29 }
 0x37a   :  { %3226 = vmatprep.mubr.msk.bf16.mxu1 %vm3280_vm0, %v3278_v1 }
 0x381   :  { %3227 = vmatmul.mubr.bf16.gmra.mrb[32].mxu1 %v1732_v12 }
 0x424   :  { %v1818_v26 = vpop.f32.mrb[12].mxu1  ;;  %v2051_v32 = vpop.f32.mrb[24].mxu0 }
 0x425   :  { %v1845_v13 = vcombine.high %v1818_v26, %v1818_v26  ;;  %v3954_v42 = vrot.slane %v1818_v26, %v3455_v14  ;;  %v2078_v15 = vcombine.high %v2051_v32, %v2051_v32  ;;  %v2085_v6 = vrot.slane %v2051_v32, %v3455_v14  ;;  %v3164_v33 = vpop.f32.mrb[13].mxu1  ;;  %v3192_v34 = vpop.f32.mrb[25].mxu0 }
 0x426   :  { %v1821_v43 = vpop.f32.mrb[14].mxu1  ;;  %v2054_v45 = vpop.f32.mrb[26].mxu0 }
 0x427   :  { %v3958_v39 = vrot.slane %v1845_v13, %v3455_v14  ;;  %v1860_v1 = vcombine.high %v3954_v42, %v3954_v42  ;;  %v2092_v40 = vrot.slane %v2078_v15, %v3455_v14  ;;  %v2093_v46 = vcombine.high %v2085_v6, %v2085_v6  ;;  %v3165_v52 = vpop.f32.mrb[15].mxu1  ;;  %v3193_v53 = vpop.f32.mrb[27].mxu0 }
 0x428   :  { %v3002_v55 = vrot.slane %v2085_v6, 9  ;;  %v1862_v20 = vcombine.high %v1821_v43, %v1821_v43  ;;  %v3964_v61 = vrot.slane %v1821_v43, %v3455_v14  ;;  %v2095_v47 = vcombine.high %v2054_v45, %v2054_v45 }
 0x429   :  { %v1861_v23 = vcombine.high %v3958_v39, %v3958_v39  ;;  %v2094_v50 = vcombine.high %v2092_v40, %v2092_v40  ;;  %v2156_v44 = vrot.slane %v2093_v46, 7  ;;  %v2159_v48 = vrot.slane %v2092_v40, 7 }
 0x42a   :  { %v3969_v63 = vrot.slane %v1862_v20, %v3455_v14  ;;  %v1877_v60 = vcombine.high %v3964_v61, %v3964_v61  ;;  %v3974_v3 = vrot.slane %v2054_v45, %v3455_v14  ;;  %v3977_v11 = vrot.slane %v2095_v47, %v3455_v14 }
 0x42b   :  { %v2158_v0 = vrot.slane %v2156_v44, 2  ;;  %v3979_v58 = vrot.slane %v2159_v48, 2  ;;  %v3981_v2 = vrot.slane %v2094_v50, 7  ;;  %v3985_v8 = vsel %vm3502_vm8, %v3002_v55, %v2156_v44 }
 0x42c   :  { %v1878_v41 = vcombine.high %v3969_v63, %v3969_v63  ;;  %v2110_v56 = vcombine.high %v3974_v3, %v3974_v3  ;;  %v2111_v54 = vcombine.high %v3977_v11, %v3977_v11  ;;  %v2165_v9 = vrot.slane %v3974_v3, 7  ;;  %v1826_v37 = vpop.f32.mrb[16].mxu1  ;;  %v2059_v62 = vpop.f32.mrb[28].mxu0 }
 0x42d   :  { %v2164_v27 = vrot.slane %v3981_v2, 2  ;;  %v2171_v19 = vrot.slane %v3977_v11, 7  ;;  %v1879_v7 = vcombine.high %v1826_v37, %v1826_v37  ;;  %v3997_v24 = vrot.slane %v1826_v37, %v3455_v14  ;;  %v3168_v59 = vpop.f32.mrb[17].mxu1  ;;  %v3196_v36 = vpop.f32.mrb[29].mxu0 }
 0x42e   :  { %v4001_v5 = vrot.slane %v2165_v9, 2  ;;  %v4003_v4 = vrot.slane %v2110_v56, 7  ;;  %v4005_v22 = vrot.slane %v2111_v54, 7  ;;  %v2112_v35 = vcombine.high %v2059_v62, %v2059_v62  ;;  %v1829_v28 = vpop.f32.mrb[18].mxu1  ;;  %v2062_v17 = vpop.f32.mrb[30].mxu0 }
 0x42f   :  { %v4009_v18 = vrot.slane %v2171_v19, 2  ;;  %v4012_v30 = vrot.slane %v1879_v7, %v3455_v14  ;;  %v1894_v29 = vcombine.high %v3997_v24, %v3997_v24  ;;  %v2119_v57 = vrot.slane %v2059_v62, %v3455_v14  ;;  %v3169_v51 = vpop.f32.mrb[19].mxu1  ;;  %v3197_v25 = vpop.f32.mrb[31].mxu0 }
 0x430   :  { %v2170_v31 = vrot.slane %v4003_v4, 2  ;;  %v2176_v12 = vrot.slane %v4005_v22, 2  ;;  %v2126_v16 = vrot.slane %v2112_v35, %v3455_v14  ;;  %v1896_v21 = vcombine.high %v1829_v28, %v1829_v28 }
 0x431   :  { %v1895_v10 = vcombine.high %v4012_v30, %v4012_v30  ;;  %v2127_v26 = vcombine.high %v2119_v57, %v2119_v57  ;;  %v2177_v32 = vrot.slane %v2119_v57, 7  ;;  %v4023_v13 = vrot.slane %v1829_v28, %v3455_v14 }
 0x432   :  { %v2128_v15 = vcombine.high %v2126_v16, %v2126_v16  ;;  %v2181_v6 = vrot.slane %v2126_v16, 7  ;;  %v4026_v33 = vrot.slane %v1896_v21, %v3455_v14  ;;  %v2129_v34 = vcombine.high %v2062_v17, %v2062_v17 }
 0x433   :  { %v3003_v43 = vrot.slane %v2127_v26, 9  ;;  %v1911_v45 = vcombine.high %v4023_v13, %v4023_v13  ;;  %v2136_v40 = vrot.slane %v2062_v17, %v3455_v14  ;;  %v2160_v46 = vsel %vm3502_vm8, %v2158_v0, %v2159_v48 }
 0x434   :  { %v2183_v52 = vrot.slane %v2181_v6, 2  ;;  %v2184_v53 = vrot.slane %v2128_v15, 7  ;;  %v1912_v55 = vcombine.high %v4026_v33, %v4026_v33  ;;  %v2143_v20 = vrot.slane %v2129_v34, %v3455_v14  ;;  %v1834_v47 = vpop.f32.mrb[20].mxu1  ;;  %v2067_v50 = vpop.f32.mrb[32].mxu0 }
 0x435   :  { %v2144_v44 = vcombine.high %v2136_v40, %v2136_v40  ;;  %v2187_v56 = vrot.slane %v2136_v40, 7  ;;  %v1919_v54 = vrot.slane %v1834_v47, %v3455_v14  ;;  %v2152_v37 = vrot.slane %v2067_v50, %v3455_v14  ;;  %v3172_v62 = vpop.f32.mrb[21].mxu1  ;;  %v3200_v7 = vpop.f32.mrb[33].mxu0 }
 0x436   :  { %v2186_v59 = vrot.slane %v2184_v53, 2  ;;  %v2145_v36 = vcombine.high %v2143_v20, %v2143_v20  ;;  %v2193_v48 = vrot.slane %v2143_v20, 7  ;;  %v1837_v0 = vpop.f32.mrb[22].mxu1  ;;  %v2070_v35 = vpop.f32.mrb[34].mxu0  ;;  %v2163_v28 = vsel %vm3502_vm8, %v3979_v58, %v3981_v2 }
 0x437   :  { %v2189_v17 = vrot.slane %v2187_v56, 2  ;;  %v2190_v57 = vrot.slane %v2144_v44, 7  ;;  %v2153_v51 = vcombine.high %v2152_v37, %v2152_v37  ;;  %v2199_v25 = vrot.slane %v2152_v37, 7  ;;  %v3173_v16 = vpop.f32.mrb[23].mxu1  ;;  %v3201_v21 = vpop.f32.mrb[35].mxu0 }
 0x438   :  { %v2195_v26 = vrot.slane %v2193_v48, 2  ;;  %v2196_v15 = vrot.slane %v2145_v36, 7  ;;  %v2220_v34 = vadd.f32 %v3985_v8, %v3954_v42  ;;  %v2221_v40 = vadd.f32 %v2160_v46, %v1860_v1 }
 0x439   :  { %v2192_v20 = vrot.slane %v2190_v57, 2  ;;  %v2201_v47 = vrot.slane %v2199_v25, 2  ;;  %v2202_v50 = vrot.slane %v2153_v51, 7  ;;  %v2222_v58 = vadd.f32 %v2163_v28, %v3958_v39 }
 0x43a   :  { %v2198_v62 = vrot.slane %v2196_v15, 2  ;;  %v2166_v44 = vsel %vm3502_vm8, %v2164_v27, %v2165_v9  ;;  %v2169_v8 = vsel %vm3502_vm8, %v4001_v5, %v4003_v4  ;;  %v2172_v42 = vsel %vm3502_vm8, %v2170_v31, %v2171_v19 }
 0x43b   :  { %v2175_v1 = vsel %vm3502_vm8, %v4009_v18, %v4005_v22  ;;  %v2223_v3 = vadd.f32 %v2166_v44, %v1861_v23  ;;  %v2224_v2 = vadd.f32 %v2169_v8, %v3964_v61  ;;  %v2225_v9 = vadd.f32 %v2172_v42, %v1877_v60 }
 0x43c   :  { %v2226_v11 = vadd.f32 %v2175_v1, %v3969_v63  ;;  %v2178_v27 = vsel %vm3502_vm8, %v2176_v12, %v2177_v32  ;;  %v2182_v19 = vsel %vm3502_vm8, %v3003_v43, %v2181_v6  ;;  %v2185_v5 = vsel %vm3502_vm8, %v2183_v52, %v2184_v53 }
 0x43d   :  { %v2227_v39 = vadd.f32 %v2178_v27, %v1878_v41  ;;  %v2228_v61 = vadd.f32 %v2182_v19, %v1894_v29  ;;  %v2229_v23 = vadd.f32 %v2185_v5, %v4012_v30  ;;  %v2188_v60 = vsel %vm3502_vm8, %v2186_v59, %v2187_v56 }
 0x43e   :  { %v2191_v4 = vsel %vm3502_vm8, %v2189_v17, %v2190_v57  ;;  %v2194_v22 = vsel %vm3502_vm8, %v2192_v20, %v2193_v48  ;;  %v2197_v18 = vsel %vm3502_vm8, %v2195_v26, %v2196_v15  ;;  %v2230_v63 = vadd.f32 %v2188_v60, %v1895_v10 }
 0x43f   :  { %v2231_v41 = vadd.f32 %v2191_v4, %v4023_v13  ;;  %v2232_v24 = vadd.f32 %v2194_v22, %v1911_v45  ;;  %v4100_v29 = vadd.f32 %v2197_v18, %v4026_v33  ;;  %v2200_v31 = vsel %vm3502_vm8, %v2198_v62, %v2199_v25 }
 0x440   :  { %v2203_v12 = vsel %vm3502_vm8, %v2201_v47, %v2202_v50  ;;  %v4106_v32 = vadd.f32 %v2200_v31, %v1912_v55 }
 0x441   :  { %v4108_v6 = vadd.f32 %v2203_v12, %v1919_v54 }
 0x444   :  { %v2335_v43 = vpop.f32.mrb[24].mxu1 }
 0x445   :  { %v2362_v46 = vcombine.high %v2335_v43, %v2335_v43  ;;  %v2369_v30 = vrot.slane %v2335_v43, %v3455_v14  ;;  %v3220_v10 = vpop.f32.mrb[25].mxu1 }
 0x446   :  { %v2338_v13 = vpop.f32.mrb[26].mxu1 }
 0x447   :  { %v2376_v45 = vrot.slane %v2362_v46, %v3455_v14  ;;  %v2377_v33 = vcombine.high %v2369_v30, %v2369_v30  ;;  %v2379_v52 = vcombine.high %v2338_v13, %v2338_v13  ;;  %v2386_v53 = vrot.slane %v2338_v13, %v3455_v14  ;;  %v3221_v56 = vpop.f32.mrb[27].mxu1 }
 0x449   :  { %v2378_v37 = vcombine.high %v2376_v45, %v2376_v45  ;;  %v4113_v49 = vadd.f32 %v2377_v33, %v2220_v34  ;;  %v4115_v55 = vadd.f32 %v2376_v45, %v2221_v40  ;;  %v2393_v54 = vrot.slane %v2379_v52, %v3455_v14 }
 0x44a   :  { %v2394_v7 = vcombine.high %v2386_v53, %v2386_v53  ;;  %v4118_v59 = vadd.f32 %v2386_v53, %v2223_v3 }
 0x44b   :  { %v4120_v36 = vadd.f32 %v2378_v37, %v2222_v58  ;;  %v2395_v48 = vcombine.high %v2393_v54, %v2393_v54  ;;  %v4124_v35 = vadd.f32 %v2393_v54, %v2225_v9  ;;  %v2485_v21 = vcombine.low %v4113_v49, %v4115_v55 }
 0x44c   :  { %v4122_v0 = vadd.f32 %v2394_v7, %v2224_v2  ;;  %v2343_v28 = vpop.f32.mrb[28].mxu1  ;;  %v2578_v15 = vmul.f32 %v4113_v49, %v4113_v49  ;;  %v2579_v34 = vmul.f32 %v4115_v55, %v4115_v55  ;;  %v2581_v50 = vmul.f32 %v4118_v59, %v4118_v59 }
 0x44d   :  { %v3224_v17 = vpop.f32.mrb[29].mxu1  ;;  %v4126_v57 = vadd.f32 %v2395_v48, %v2226_v11  ;;  %v2396_v25 = vcombine.high %v2343_v28, %v2343_v28  ;;  %v2403_v26 = vrot.slane %v2343_v28, %v3455_v14  ;;  %v2580_v47 = vmul.f32 %v4120_v36, %v4120_v36 }
 0x44e   :  { %v2346_v51 = vpop.f32.mrb[30].mxu1  ;;  %v2582_v44 = vmul.f32 %v4122_v0, %v4122_v0  ;;  %v2583_v3 = vmul.f32 %v4124_v35, %v4124_v35  ;;  %v2486_v4 = vcombine.low %v4120_v36, %v4118_v59  ;;  %v2502_v22 = vcombine.low %v4122_v0, %v4124_v35 }
 0x44f   :  { %v3225_v16 = vpop.f32.mrb[31].mxu1  ;;  %v2410_v40 = vrot.slane %v2396_v25, %v3455_v14  ;;  %v2412_v20 = vcombine.high %v2346_v51, %v2346_v51  ;;  %v4140_v58 = vadd.f32 %v2403_v26, %v2227_v39  ;;  %v2419_v62 = vrot.slane %v2346_v51, %v3455_v14 }
 0x450   :  { %v2584_v5 = vmul.f32 %v4126_v57, %v4126_v57  ;;  %v2493_v45 = vrot.slane %v2485_v21, %v3455_v14  ;;  %v2610_v33 = vcombine.low %v2578_v15, %v2579_v34  ;;  %v2611_v52 = vcombine.low %v2580_v47, %v2581_v50 }
 0x451   :  { %v2411_v8 = vcombine.high %v2410_v40, %v2410_v40  ;;  %v4145_v42 = vadd.f32 %v2410_v40, %v2228_v61  ;;  %v2426_v1 = vrot.slane %v2412_v20, %v3455_v14  ;;  %v2585_v2 = vmul.f32 %v4140_v58, %v4140_v58 }
 0x452   :  { %v2427_v9 = vcombine.high %v2419_v62, %v2419_v62  ;;  %v4152_v11 = vadd.f32 %v2419_v62, %v2230_v63  ;;  %v2503_v18 = vcombine.low %v4126_v57, %v4140_v58  ;;  %v2627_v53 = vcombine.low %v2582_v44, %v2583_v3 }
 0x453   :  { %v4154_v19 = vadd.f32 %v2411_v8, %v2229_v23  ;;  %v2428_v39 = vcombine.high %v2426_v1, %v2426_v1  ;;  %v4158_v61 = vadd.f32 %v2426_v1, %v2232_v24  ;;  %v2586_v31 = vmul.f32 %v4145_v42, %v4145_v42 }
 0x454   :  { %v2351_v27 = vpop.f32.mrb[32].mxu1  ;;  %v4166_v63 = vadd.f32 %v2427_v9, %v2231_v41  ;;  %v2628_v12 = vcombine.low %v2584_v5, %v2585_v2  ;;  %v2588_v41 = vmul.f32 %v4152_v11, %v4152_v11  ;;  %v2500_v7 = vrot.slane %v2486_v4, %v3455_v14 }
 0x455   :  { %v3228_v60 = vpop.f32.mrb[33].mxu1  ;;  %v2587_v24 = vmul.f32 %v4154_v19, %v4154_v19  ;;  %v4173_v43 = vadd.f32 %v2428_v39, %v4100_v29  ;;  %v2519_v30 = vcombine.low %v4145_v42, %v4154_v19  ;;  %v2517_v29 = vrot.slane %v2503_v18, %v3455_v14 }
 0x456   :  { %v2354_v23 = vpop.f32.mrb[34].mxu1  ;;  %v2520_v10 = vcombine.low %v4152_v11, %v4166_v63  ;;  %v2589_v13 = vmul.f32 %v4166_v63, %v4166_v63  ;;  %v2435_v54 = vrot.slane %v2351_v27, %v3455_v14  ;;  %v2510_v48 = vrot.slane %v2502_v22, %v3455_v14 }
 0x457   :  { %v3229_v46 = vpop.f32.mrb[35].mxu1  ;;  %v2644_v56 = vcombine.low %v2586_v31, %v2587_v24  ;;  %v2642_v28 = vrot.slane %v2628_v12, %v3455_v14  ;;  %v2591_v17 = vmul.f32 %v4173_v43, %v4173_v43  ;;  %v2527_v51 = vrot.slane %v2519_v30, %v3455_v14 }
 0x458   :  { %v2645_v37 = vcombine.low %v2588_v41, %v2589_v13  ;;  %v2534_v25 = vrot.slane %v2520_v10, %v3455_v14  ;;  %v2436_v16 = vcombine.high %v2435_v54, %v2435_v54  ;;  %v4194_v21 = vadd.f32 %v2435_v54, %v4106_v32 }
 0x459   :  { %v2625_v26 = vrot.slane %v2611_v52, %v3455_v14  ;;  %v2635_v15 = vrot.slane %v2627_v53, %v3455_v14  ;;  %v2536_v34 = vcombine.low %v4158_v61, %v4173_v43  ;;  %v2590_v40 = vmul.f32 %v4158_v61, %v4158_v61 }
 0x45a   :  { %v2518_v20 = vcombine.low %v2510_v48, %v2517_v29  ;;  %v2652_v47 = vrot.slane %v2644_v56, %v3455_v14  ;;  %v2659_v50 = vrot.slane %v2645_v37, %v3455_v14  ;;  %v4205_v62 = vadd.f32 %v2436_v16, %v4108_v6 }
 0x45b   :  { %v2618_v32 = vrot.slane %v2610_v33, %v3455_v14  ;;  %v2501_v44 = vcombine.low %v2493_v45, %v2500_v7  ;;  %v2643_v8 = vcombine.low %v2635_v15, %v2642_v28  ;;  %v2661_v1 = vcombine.low %v2590_v40, %v2591_v17 }
 0x45c   :  { %v2535_v3 = vcombine.low %v2527_v51, %v2534_v25  ;;  %v2537_v2 = vcombine.low %v4194_v21, %v4205_v62  ;;  %v2592_v9 = vmul.f32 %v4194_v21, %v4194_v21  ;;  %v2593_v27 = vmul.f32 %v4205_v62, %v4205_v62 }
 0x45d   :  { %v2626_v5 = vcombine.low %v2618_v32, %v2625_v26  ;;  %v2544_v39 = vrot.slane %v2536_v34, %v3455_v14  ;;  %v2557_v4 = vadd.f32 %v2518_v20, %v2501_v44  ;;  %v2660_v22 = vcombine.low %v2652_v47, %v2659_v50 }
 0x45e   :  { %v2551_v6 = vrot.slane %v2537_v2, %v3455_v14  ;;  %v2662_v60 = vcombine.low %v2592_v9, %v2593_v27  ;;  %v2669_v18 = vrot.slane %v2661_v1, %v3455_v14 }
 0x45f   :  { %v2558_v24 = vadd.f32 %v2557_v4, %v2535_v3  ;;  %v2682_v12 = vadd.f32 %v2643_v8, %v2626_v5 }
 0x460   :  { %v2552_v23 = vcombine.low %v2544_v39, %v2551_v6  ;;  %v2676_v31 = vrot.slane %v2662_v60, %v3455_v14  ;;  %v2708_v60 = vld [vmem:[%s4279_s5] sm:$0x1] }
 0x461   :  { %v2683_v10 = vadd.f32 %v2682_v12, %v2660_v22 }
 0x462   :  { %v2559_v46 = vadd.f32 %v2558_v24, %v2552_v23  ;;  %v2677_v30 = vcombine.low %v2669_v18, %v2676_v31  ;;  %v2712_v18 = vld [vmem:[%s4280_s6] sm:$0x1] }
 0x464   :  { %v2560_v41 = vrot.slane %v2559_v46, 4  ;;  %v2684_v13 = vadd.f32 %v2683_v10, %v2677_v30 }
 0x466   :  { %v2561_v45 = vadd.f32 %v2560_v41, %v2559_v46  ;;  %v2685_v33 = vrot.slane %v2684_v13, 4 }
 0x468   :  { %v2562_v52 = vrot.slane %v2561_v45, 2  ;;  %v2686_v53 = vadd.f32 %v2685_v33, %v2684_v13 }
 0x46a   :  { %v2563_v29 = vadd.f32 %v2562_v52, %v2561_v45  ;;  %v2687_v56 = vrot.slane %v2686_v53, 2 }
 0x46c   :  { %v2564_v37 = vrot.slane %v2563_v29, 1  ;;  %v2688_v54 = vadd.f32 %v2687_v56, %v2686_v53 }
 0x46e   :  { %v2565_v7 = vadd.f32 %v2564_v37, %v2563_v29  ;;  %v2689_v48 = vrot.slane %v2688_v54, 1 }
 0x470   :  { %2566 = vrot.lane.b32.xlu0 %v2565_v7, %s3282_s1  ;;  %v2690_v28 = vadd.f32 %v2689_v48, %v2688_v54 }
 0x472   :  { %2691 = vrot.lane.b32.xlu1 %v2690_v28, %s3282_s1 }
 0x4e2   :  { %v2567_v17 = vpop.permute.xlu0 %2566 }
 0x4e3   :  { %v2568_v51 = vadd.f32 %v2567_v17, %v2565_v7 }
 0x4e4   :  { %v2692_v25 = vpop.permute.xlu1 %2691 }
 0x4e5   :  { %v2693_v16 = vadd.f32 %v2692_v25, %v2690_v28  ;;  %2569 = vrot.lane.b32.xlu0 %v2568_v51, %s3283_s13 }
 0x4e7   :  { %2694 = vrot.lane.b32.xlu1 %v2693_v16, %s3283_s13 }
 0x557   :  { %v2570_v26 = vpop.permute.xlu0 %2569 }
 0x558   :  { %v2571_v15 = vadd.f32 %v2570_v26, %v2568_v51 }
 0x559   :  { %v2695_v34 = vpop.permute.xlu1 %2694 }
 0x55a   :  { %v2696_v40 = vadd.f32 %v2695_v34, %v2693_v16  ;;  %2572 = vrot.lane.b32.xlu0 %v2571_v15, %s3284_s14 }
 0x55c   :  { %2697 = vrot.lane.b32.xlu1 %v2696_v40, %s3284_s14 }
 0x5cc   :  { %v2573_v20 = vpop.permute.xlu0 %2572 }
 0x5cd   :  { %v2574_v47 = vadd.f32 %v2573_v20, %v2571_v15 }
 0x5ce   :  { %v2698_v50 = vpop.permute.xlu1 %2697 }
 0x5cf   :  { %v2699_v32 = vadd.f32 %v2698_v50, %v2696_v40  ;;  %2575 = vrot.lane.b32.xlu0 %v2574_v47, %s3285_s15 }
 0x5d1   :  { %2700 = vrot.lane.b32.xlu1 %v2699_v32, %s3285_s15 }
 0x641   :  { %v2576_v44 = vpop.permute.xlu0 %2575 }
 0x642   :  { %v2577_v8 = vadd.f32 %v2576_v44, %v2574_v47 }
 0x643   :  { %v2701_v1 = vpop.permute.xlu1 %2700 }
 0x644   :  { %v2703_v3 = vmul.f32 0.001953125, %v2577_v8  ;;  %v2702_v2 = vadd.f32 %v2701_v1, %v2699_v32 }
 0x646   :  { %v2705_v9 = vmul.f32 %v2703_v3, %v2703_v3  ;;  %v2704_v27 = vmul.f32 0.001953125, %v2702_v2 }
 0x648   :  { %v2706_v5 = vsub.f32 %v2704_v27, %v2705_v9 }
 0x64a   :  { %v2707_v39 = vmax.f32 %v2706_v5, 0.0 }
 0x64c   :  { %v2709_v6 = vadd.f32 1e-05, %v2707_v39 }
 0x64e   :  { %3276 = vrsqrt.f32 %v2709_v6 }
 0x658   :  { %v3277_v4 = vpop.eup %3276 }
 0x659   :  { %v2711_v22 = vmul.f32 %v3277_v4, %v2708_v60 }
 0x65b   :  { %v2713_v23 = vmul.f32 %v2711_v22, %v2703_v3  ;;  %v2719_v31 = vrot.slane %v2711_v22, %v3827_v38 }
 0x65d   :  { %v2714_v24 = vsub.f32 %v2712_v18, %v2713_v23  ;;  %v2720_v12 = vcombine.high %v2719_v31, %v2719_v31  ;;  %v2727_v46 = vrot.slane %v2719_v31, %v3455_v14 }
 0x65f   :  { %v2734_v30 = vrot.slane %v2720_v12, %v3455_v14  ;;  %v2735_v10 = vcombine.high %v2727_v46, %v2727_v46  ;;  %v2761_v41 = vrot.slane %v2714_v24, %v3827_v38  ;;  %v2741_v45 = vmul.f32 %v2727_v46, %v4113_v49 }
 0x660   :  { %v2745_v33 = vmul.f32 %v2727_v46, %v4122_v0  ;;  %v2749_v52 = vmul.f32 %v2727_v46, %v4145_v42  ;;  %v2753_v53 = vmul.f32 %v2727_v46, %v4158_v61 }
 0x661   :  { %v2736_v13 = vcombine.high %v2734_v30, %v2734_v30  ;;  %v2742_v29 = vmul.f32 %v2735_v10, %v4115_v55  ;;  %v2743_v56 = vmul.f32 %v2734_v30, %v4120_v36  ;;  %v2746_v37 = vmul.f32 %v2735_v10, %v4124_v35 }
 0x662   :  { %v2747_v54 = vmul.f32 %v2734_v30, %v4126_v57  ;;  %v2750_v7 = vmul.f32 %v2735_v10, %v4154_v19  ;;  %v2751_v38 = vmul.f32 %v2734_v30, %v4152_v11  ;;  %v2762_v48 = vcombine.high %v2761_v41, %v2761_v41 }
 0x663   :  { %v2769_v49 = vrot.slane %v2761_v41, %v3455_v14  ;;  %v2744_v0 = vmul.f32 %v2736_v13, %v4118_v59  ;;  %v2748_v42 = vmul.f32 %v2736_v13, %v4140_v58  ;;  %v2752_v61 = vmul.f32 %v2736_v13, %v4166_v63 }
 0x664   :  { %v2754_v55 = vmul.f32 %v2735_v10, %v4173_v43  ;;  %v2755_v36 = vmul.f32 %v2734_v30, %v4194_v21  ;;  %v2756_v35 = vmul.f32 %v2736_v13, %v4205_v62  ;;  %v2776_v57 = vrot.slane %v2762_v48, %v3455_v14 }
 0x665   :  { %v2777_v19 = vcombine.high %v2769_v49, %v2769_v49  ;;  %v2783_v28 = vadd.f32 %v2769_v49, %v2741_v45  ;;  %v2787_v11 = vadd.f32 %v2769_v49, %v2745_v33  ;;  %v2791_v17 = vadd.f32 %v2769_v49, %v2749_v52 }
 0x666   :  { %v2795_v51 = vadd.f32 %v2769_v49, %v2753_v53  ;;  %v2778_v25 = vcombine.high %v2776_v57, %v2776_v57  ;;  %v2785_v59 = vadd.f32 %v2776_v57, %v2743_v56  ;;  %v2789_v58 = vadd.f32 %v2776_v57, %v2747_v54 }
 0x667   :  { %v2784_v16 = vadd.f32 %v2777_v19, %v2742_v29  ;;  %v2788_v26 = vadd.f32 %v2777_v19, %v2746_v37  ;;  %v2792_v15 = vadd.f32 %v2777_v19, %v2750_v7  ;;  %v2793_v63 = vadd.f32 %v2776_v57, %v2751_v38 }
 0x668   :  { %v2796_v34 = vadd.f32 %v2777_v19, %v2754_v55  ;;  %v2786_v43 = vadd.f32 %v2778_v25, %v2744_v0  ;;  %v2790_v40 = vadd.f32 %v2778_v25, %v2748_v42  ;;  %v2794_v21 = vadd.f32 %v2778_v25, %v2752_v61 }
 0x669   :  { %v2797_v20 = vadd.f32 %v2776_v57, %v2755_v36  ;;  %v2798_v62 = vadd.f32 %v2778_v25, %v2756_v35  ;;  %v2799_v47 = vmax.f32 %v2783_v28, 0.0  ;;  %v2800_v50 = vmax.f32 %v2784_v16, 0.0 }
 0x66a   :  { %v2801_v32 = vmax.f32 %v2785_v59, 0.0  ;;  %v2802_v44 = vmax.f32 %v2786_v43, 0.0  ;;  %v2803_v8 = vmax.f32 %v2787_v11, 0.0  ;;  %v2804_v1 = vmax.f32 %v2788_v26, 0.0 }
 0x66b   :  { %v2805_v3 = vmax.f32 %v2789_v58, 0.0  ;;  %v2806_v2 = vmax.f32 %v2790_v40, 0.0  ;;  %v2807_v9 = vmax.f32 %v2791_v17, 0.0  ;;  %v2808_v27 = vmax.f32 %v2792_v15, 0.0 }
 0x66c   :  { %v2809_v5 = vmax.f32 %v2793_v63, 0.0  ;;  %v2810_v39 = vmax.f32 %v2794_v21, 0.0  ;;  %v2811_v6 = vmax.f32 %v2795_v51, 0.0  ;;  %v2812_v60 = vmax.f32 %v2796_v34, 0.0 }
 0x66d   :  { %v2813_v4 = vmax.f32 %v2797_v20, 0.0  ;;  %v2814_v22 = vmax.f32 %v2798_v62, 0.0  ;;  %v2831_v18 = vcombine.low %v2799_v47, %v2800_v50  ;;  %v2832_v23 = vcombine.low %v2801_v32, %v2802_v44 }
 0x66e   :  { %v2848_v31 = vcombine.low %v2803_v8, %v2804_v1  ;;  %v2849_v24 = vcombine.low %v2805_v3, %v2806_v2  ;;  %v2865_v12 = vcombine.low %v2807_v9, %v2808_v27  ;;  %v2866_v46 = vcombine.low %v2809_v5, %v2810_v39 }
 0x66f   :  { %v2882_v30 = vcombine.low %v2811_v6, %v2812_v60  ;;  %v2839_v10 = vrot.slane %v2831_v18, %v3455_v14  ;;  %v2846_v41 = vrot.slane %v2832_v23, %v3455_v14  ;;  %v2883_v13 = vcombine.low %v2813_v4, %v2814_v22 }
 0x670   :  { %v2856_v45 = vrot.slane %v2848_v31, %v3455_v14  ;;  %v2863_v33 = vrot.slane %v2849_v24, %v3455_v14  ;;  %v2873_v52 = vrot.slane %v2865_v12, %v3455_v14  ;;  %v2880_v53 = vrot.slane %v2866_v46, %v3455_v14 }
 0x671   :  { %v2847_v29 = vcombine.low %v2839_v10, %v2846_v41  ;;  %v2890_v56 = vrot.slane %v2882_v30, %v3455_v14  ;;  %v2897_v37 = vrot.slane %v2883_v13, %v3455_v14 }
 0x672   :  { %v2864_v54 = vcombine.low %v2856_v45, %v2863_v33  ;;  %v2881_v7 = vcombine.low %v2873_v52, %v2880_v53 }
 0x673   :  { %v2898_v38 = vcombine.low %v2890_v56, %v2897_v37  ;;  %2903 = vst [vmem:[%s4281_s7] sm:$0xff] %v2847_v29 }
 0x674   :  { %2904 = vst [vmem:[%s4281_s7 + $0x8] sm:$0xff] %v2864_v54  ;;  %2905 = vst [vmem:[%s4281_s7 + $0x10] sm:$0xff] %v2881_v7 }
 0x675   :  { %2906 = vst [vmem:[%s4281_s7 + $0x18] sm:$0xff] %v2898_v38 }

</bundles_post_ra>
